<compile_context>
chip_gen: v7x
topology: tpu7x:2x2x1
jax: 0.10.0
libtpu: 0.0.40
codegen_flags: <defaults>
</compile_context>

<pallas_src>
import math

import jax
import jax.numpy as jnp
from jax.experimental import pallas as pl
from jax.experimental.pallas import tpu as pltpu

SIZE = 32          # model dim
HEADS = 4
DK = SIZE // HEADS
FF = 64            # feed-forward hidden units
EPS = 1e-12        # espnet LayerNorm eps
NEG_INF = -1e30
ROW_TILE = 1024    # target rows (batch*time) per grid step


def _layernorm(x, g, b):
    mu = jnp.mean(x, axis=-1, keepdims=True)
    var = jnp.mean((x - mu) ** 2, axis=-1, keepdims=True)
    return (x - mu) * jax.lax.rsqrt(var + EPS) * g + b


def fusion_kernel(xq_ref, xkv_ref, mask_ref, wqkv_ref, wmisc_ref, vec_ref, out_ref):
    bt, qt, d = xq_ref.shape
    tkv = xkv_ref.shape[1]
    rq = bt * qt          # query rows processed this step
    rkv = bt * tkv        # key/value rows processed this step

    # ---- unpack lane-dense parameter slabs (static slices, once per step) ----
    wqkv = wqkv_ref[...]                 # (2D, 4D) block-diag [Wq*s, 0, 0; 0, Wk, Wv]
    wmisc = wmisc_ref[...]               # (2D, 4D): Wo | W1 | W2
    wo = wmisc[0:d, 0:d]
    w1 = wmisc[0:d, d:d + FF]
    w2 = wmisc[:, d + FF:d + FF + d]
    vec = vec_ref[...]                   # (4, 4D) bias / layernorm slab
    g1 = vec[0:1, 0:d]; g2 = vec[0:1, d:2 * d]; g3 = vec[0:1, 2 * d:3 * d]; bo = vec[0:1, 3 * d:4 * d]
    b1 = vec[1:2, 0:d]; b2 = vec[1:2, d:2 * d]; b3 = vec[1:2, 2 * d:3 * d]; bf2 = vec[1:2, 3 * d:4 * d]
    bqkv = vec[2:3, :]                   # (1, 4D) = [bq*scale | bk | bv | 0]
    bf1 = vec[3:4, 0:FF]

    # ---- row-wise section: fold (batch, time) onto sublanes ----
    xq = xq_ref[...].reshape(rq, d)
    xkv = xkv_ref[...].reshape(rkv, d)

    qn = _layernorm(xq, g1, b1)          # norm1(x_q)
    kvn = _layernorm(xkv, g2, b2)        # norm2(x_kv)

    if qt == tkv:
        # Fused Q|K|V projection: one (rows, 2D) @ (2D, 4D) lane-dense matmul.
        qkv_in = jnp.concatenate([qn, kvn], axis=-1)                      # (rows, 64)
        qkv = jnp.dot(qkv_in, wqkv, preferred_element_type=jnp.float32) + bqkv
        q = qkv[:, 0:d]                  # already pre-scaled by 1/sqrt(dk)
        k = qkv[:, d:2 * d]
        v = qkv[:, 2 * d:3 * d]
        res = xkv                        # residual rows == kv rows
    else:
        # Query-tiled path (long sequences): qn has fewer rows than kvn.
        wq = wqkv[0:d, 0:d]
        wkv = wqkv[d:2 * d, d:3 * d]
        q = jnp.dot(qn, wq, preferred_element_type=jnp.float32) + bqkv[:, 0:d]
        kvp = jnp.dot(kvn, wkv, preferred_element_type=jnp.float32) + bqkv[:, d:3 * d]
        k = kvp[:, 0:d]
        v = kvp[:, d:2 * d]
        qi = pl.program_id(1)
        start = pl.multiple_of(qi * qt, 8)
        res = xkv_ref[:, pl.ds(start, qt), :].reshape(rq, d)

    # ---- attention: all heads in one batched contraction (no scratch) ----
    qh = q.reshape(bt, qt, HEADS, DK).transpose(0, 2, 1, 3).reshape(bt * HEADS, qt, DK)
    kh = k.reshape(bt, tkv, HEADS, DK).transpose(0, 2, 1, 3).reshape(bt * HEADS, tkv, DK)
    vh = v.reshape(bt, tkv, HEADS, DK).transpose(0, 2, 1, 3).reshape(bt * HEADS, tkv, DK)

    mask_f = mask_ref[...]                                            # (bt, 1, tkv)
    keep = mask_f > 0.0
    bias = jnp.where(keep, 0.0, NEG_INF)[:, None, :, :]               # (bt, 1, 1, tkv)
    # Per-batch "any valid key" factor: masked columns already become exact 0
    # after max-subtraction + exp; only fully-masked rows (incl. zero-padded
    # batch rows) need explicit zeroing to match the reference.
    valid = (jnp.max(mask_f, axis=-1, keepdims=True) > 0.0).astype(jnp.float32)
    valid = valid[:, None, :, :]                                      # (bt, 1, 1, 1)

    s = jnp.einsum('zqd,zkd->zqk', qh, kh, preferred_element_type=jnp.float32)
    s = s.reshape(bt, HEADS, qt, tkv) + bias                          # broadcast add
    s = s - jnp.max(s, axis=-1, keepdims=True)
    p = jnp.exp(s)
    denom = jnp.sum(p, axis=-1, keepdims=True)
    r = pl.reciprocal(denom, approx=True)
    r = r * (2.0 - denom * r)            # one Newton step: EUP path, ~f32 accuracy
    p = p * (r * valid)                  # softmax + masked_fill(mask==0, 0.0)
    # TODO(synk): attention dropout skipped (eval mode -> identity)

    ctx = jnp.einsum('zqk,zkd->zqd', p.reshape(bt * HEADS, qt, tkv), vh,
                     preferred_element_type=jnp.float32)
    ctx = ctx.reshape(bt, HEADS, qt, DK).transpose(0, 2, 1, 3).reshape(rq, d)

    # single output projection over all heads
    att = jnp.dot(ctx, wo, preferred_element_type=jnp.float32) + bo

    # x = x_kv + dropout(src_attn(...)); then pre-norm FFN + residual
    x = res + att
    xn = _layernorm(x, g3, b3)
    h1 = jnp.maximum(jnp.dot(xn, w1, preferred_element_type=jnp.float32) + bf1, 0.0)
    ff = jnp.dot(h1, w2, preferred_element_type=jnp.float32) + bf2
    out_ref[...] = (x + ff).reshape(bt, qt, d).astype(out_ref.dtype)


def pack_params(params):
    """One-time parameter packing into 3 lane-dense slabs (done at init)."""
    (g1, b1, g2, b2, g3, b3, wq, bq, wk, bk, wv, bv, wo, bo, w1, bf1, w2, bf2) = params
    scale = 1.0 / math.sqrt(DK)
    D = SIZE

    # Block-diagonal fused Q|K|V weight (input = [qn | kvn]):
    #   rows 0:D   -> qn,  cols 0:D    = Wq * scale
    #   rows D:2D  -> kvn, cols D:2D   = Wk,  cols 2D:3D = Wv
    w_qkv = jnp.zeros((2 * D, 4 * D), jnp.float32)
    w_qkv = w_qkv.at[0:D, 0:D].set(wq * scale)
    w_qkv = w_qkv.at[D:2 * D, D:2 * D].set(wk)
    w_qkv = w_qkv.at[D:2 * D, 2 * D:3 * D].set(wv)

    # Wo / FFN weights slab.
    w_misc = jnp.zeros((2 * D, 4 * D), jnp.float32)
    w_misc = w_misc.at[0:D, 0:D].set(wo)                       # Wo: (32, 32)
    w_misc = w_misc.at[0:D, D:D + FF].set(w1)                  # W1: (32, 64)
    w_misc = w_misc.at[0:2 * D, D + FF:D + FF + D].set(w2)     # W2: (64, 32)

    vec = jnp.zeros((4, 4 * D), jnp.float32)
    vec = vec.at[0:1, 0:D].set(g1)
    vec = vec.at[0:1, D:2 * D].set(g2)
    vec = vec.at[0:1, 2 * D:3 * D].set(g3)
    vec = vec.at[0:1, 3 * D:4 * D].set(bo)
    vec = vec.at[1:2, 0:D].set(b1)
    vec = vec.at[1:2, D:2 * D].set(b2)
    vec = vec.at[1:2, 2 * D:3 * D].set(b3)
    vec = vec.at[1:2, 3 * D:4 * D].set(bf2)
    vec = vec.at[2:3, 0:D].set(bq * scale)
    vec = vec.at[2:3, D:2 * D].set(bk)
    vec = vec.at[2:3, 2 * D:3 * D].set(bv)
    vec = vec.at[3:4, 0:FF].set(bf1)
    return w_qkv, w_misc, vec


def _choose_tiles(B, Tq, Tkv, row_tile):
    """Pick (batch elements per step, query rows per step)."""
    bt = max(1, min(B, row_tile // max(Tq, 1)))
    qt = Tq
    if bt == 1:
        # Bound rows/step and the f32 score temporaries (HEADS*qt*Tkv*4 B each)
        # so long sequences stay well inside the scoped VMEM default on every
        # generation (incl. v7x's 64 MiB physical VMEM).
        cap = min(row_tile, max(8, (2 << 20) // max(1, HEADS * Tkv * 4)))
        cap = max(8, (cap // 8) * 8)
        if Tq > cap and Tq % 8 == 0:
            qt = 8
            for c in range(cap, 7, -8):
                if Tq % c == 0:
                    qt = c
                    break
    # v7x megacore: make sure the grid has >= 2 steps when possible so both
    # TensorCores get work.
    if pl.cdiv(B, bt) * (Tq // qt) < 2:
        if B >= 2:
            bt = pl.cdiv(B, 2)
        elif qt == Tq and Tq % 16 == 0:
            qt = Tq // 2
    return bt, qt


def attention_kqv_fusion(x_q, x_kv, mask, packed_params, row_tile=ROW_TILE):
    """Pallas wrapper. Returns (x_out, mask), like the PyTorch module."""
    w_qkv, w_misc, vec = packed_params
    B, Tq, D = x_q.shape
    Bk, Tkv, Dk = x_kv.shape
    assert B == Bk and Tq == Tkv, "residual `x_kv + att` assumes x_q/x_kv shapes match"
    assert D == SIZE and Dk == SIZE
    assert mask.shape == (B, 1, Tkv)

    mask_out = mask

    bt, qt = _choose_tiles(B, Tq, Tkv, row_tile)
    nb = pl.cdiv(B, bt)
    nq = Tq // qt

    Bp = nb * bt
    if Bp != B:
        pad = Bp - B
        x_q = jnp.pad(x_q, ((0, pad), (0, 0), (0, 0)))
        x_kv = jnp.pad(x_kv, ((0, pad), (0, 0), (0, 0)))
        mask = jnp.pad(mask, ((0, pad), (0, 0), (0, 0)))   # padded rows fully masked

    in_specs = [
        pl.BlockSpec((bt, qt, D), lambda b, q: (b, q, 0)),     # x_q (query tile)
        pl.BlockSpec((bt, Tkv, D), lambda b, q: (b, 0, 0)),    # x_kv (full keys)
        pl.BlockSpec((bt, 1, Tkv), lambda b, q: (b, 0, 0)),    # mask
        pl.BlockSpec(w_qkv.shape, lambda b, q: (0, 0)),        # fused QKV weight slab
        pl.BlockSpec(w_misc.shape, lambda b, q: (0, 0)),       # Wo / FFN weight slab
        pl.BlockSpec(vec.shape, lambda b, q: (0, 0)),          # bias / layernorm slab
    ]

    out = pl.pallas_call(
        fusion_kernel,
        out_shape=jax.ShapeDtypeStruct((Bp, Tq, D), x_q.dtype),
        grid_spec=pltpu.PrefetchScalarGridSpec(
            num_scalar_prefetch=0,
            grid=(nb, nq),
            in_specs=in_specs,
            out_specs=pl.BlockSpec((bt, qt, D), lambda b, q: (b, q, 0)),
        ),
        compiler_params=pltpu.CompilerParams(
            dimension_semantics=("parallel", "parallel")),
    )(x_q, x_kv, mask, w_qkv, w_misc, vec)

    if Bp != B:
        out = out[:B]
    return out, mask_out


def reference(x_q, x_kv, mask, params):
    """Pure-JAX reference mirroring the PyTorch forward (eval mode)."""
    (g1, b1, g2, b2, g3, b3, wq, bq, wk, bk, wv, bv, wo, bo, w1, bf1, w2, bf2) = params

    def ln(x, g, b):
        mu = x.mean(-1, keepdims=True)
        var = ((x - mu) ** 2).mean(-1, keepdims=True)
        return (x - mu) / jnp.sqrt(var + EPS) * g + b

    qn = ln(x_q, g1, b1)
    kvn = ln(x_kv, g2, b2)
    q = qn @ wq + bq
    k = kvn @ wk + bk
    v = kvn @ wv + bv
    B, Tq, D = x_q.shape
    Tkv = x_kv.shape[1]
    qh = q.reshape(B, Tq, HEADS, DK).transpose(0, 2, 1, 3)
    kh = k.reshape(B, Tkv, HEADS, DK).transpose(0, 2, 1, 3)
    vh = v.reshape(B, Tkv, HEADS, DK).transpose(0, 2, 1, 3)
    s = jnp.einsum('bhqd,bhkd->bhqk', qh, kh) / math.sqrt(DK)
    keep = (mask > 0)[:, None, :, :]
    s = jnp.where(keep, s, NEG_INF)
    p = jax.nn.softmax(s, axis=-1)
    p = jnp.where(keep, p, 0.0)
    ctx = jnp.einsum('bhqk,bhkd->bhqd', p, vh).transpose(0, 2, 1, 3).reshape(B, Tq, D)
    att = ctx @ wo + bo
    x = x_kv + att
    res = x
    xn = ln(x, g3, b3)
    ffo = jnp.maximum(xn @ w1 + bf1, 0.0) @ w2 + bf2
    return res + ffo


def make_params(key):
    ks = jax.random.split(key, 20)
    n = lambda k, shp, s=0.1: (jax.random.normal(k, shp, jnp.float32) * s)
    params = [
        1.0 + n(ks[0], (1, SIZE)),   # norm1 gamma
        n(ks[1], (1, SIZE)),         # norm1 beta
        1.0 + n(ks[2], (1, SIZE)),   # norm2 gamma
        n(ks[3], (1, SIZE)),         # norm2 beta
        1.0 + n(ks[4], (1, SIZE)),   # norm3 gamma
        n(ks[5], (1, SIZE)),         # norm3 beta
        n(ks[6], (SIZE, SIZE)),      # W_q (in, out)
        n(ks[7], (1, SIZE)),         # b_q
        n(ks[8], (SIZE, SIZE)),      # W_k
        n(ks[9], (1, SIZE)),         # b_k
        n(ks[10], (SIZE, SIZE)),     # W_v
        n(ks[11], (1, SIZE)),        # b_v
        n(ks[12], (SIZE, SIZE)),     # W_out
        n(ks[13], (1, SIZE)),        # b_out
        n(ks[14], (SIZE, FF)),       # FF w_1
        n(ks[15], (1, FF)),          # FF b_1
        n(ks[16], (FF, SIZE)),       # FF w_2
        n(ks[17], (1, SIZE)),        # FF b_2
    ]
    return params


if __name__ == "__main__":
    key = jax.random.PRNGKey(0)
    k_xq, k_xkv, k_params = jax.random.split(key, 3)

    B, T = 2, 8
    x_q = jax.random.normal(k_xq, (B, T, SIZE), jnp.float32)
    x_kv = jax.random.normal(k_xkv, (B, T, SIZE), jnp.float32)
    # mask: (B, 1, T), 1 = valid, 0 = padded (input_mask=True path)
    mask = jnp.ones((B, 1, T), jnp.float32)
    mask = mask.at[1, 0, T - 2:].set(0.0)

    params = make_params(k_params)
    packed = pack_params(params)

    out, out_mask = attention_kqv_fusion(x_q, x_kv, mask, packed)
    out = jax.block_until_ready(out)

    ref = reference(x_q, x_kv, mask, params)
    assert out.shape == (B, T, SIZE)
    err = float(jnp.max(jnp.abs(out - ref)))
    assert jnp.allclose(out, ref, atol=5e-4, rtol=5e-4), f"max abs err = {err}"

    print("KERNEL_OK")
</pallas_src>

<mosaic_0001>
module attributes {stable_mosaic.version = 11 : i64} {
  func.func @fusion_kernel(%arg0: i32, %arg1: i32, %arg2: memref<1x8x32xf32, #tpu.memory_space<vmem>>, %arg3: memref<1x8x32xf32, #tpu.memory_space<vmem>>, %arg4: memref<1x1x8xf32, #tpu.memory_space<vmem>>, %arg5: memref<64x128xf32, #tpu.memory_space<vmem>>, %arg6: memref<64x128xf32, #tpu.memory_space<vmem>>, %arg7: memref<4x128xf32, #tpu.memory_space<vmem>>, %arg8: memref<1x8x32xf32, #tpu.memory_space<vmem>>) attributes {dimension_semantics = [#tpu.dimension_semantics<parallel>, #tpu.dimension_semantics<parallel>], iteration_bounds = array<i64: 2, 1>, scalar_prefetch = 0 : i64, scratch_operands = 0 : i64, tpu.core_type = #tpu.core_type<tc>, window_params = [{transform_indices = @transform_0, window_bounds = array<i64: 1, 8, 32>}, {transform_indices = @transform_1, window_bounds = array<i64: 1, 8, 32>}, {transform_indices = @transform_2, window_bounds = array<i64: 1, 1, 8>}, {pipeline_mode = #tpu.pipeline_mode<synchronous>, transform_indices = @transform_3, window_bounds = array<i64: 64, 128>}, {pipeline_mode = #tpu.pipeline_mode<synchronous>, transform_indices = @transform_4, window_bounds = array<i64: 64, 128>}, {pipeline_mode = #tpu.pipeline_mode<synchronous>, transform_indices = @transform_5, window_bounds = array<i64: 4, 128>}, {transform_indices = @transform_6, window_bounds = array<i64: 1, 8, 32>}]} {
    %c0 = arith.constant 0 : index
    %c0_0 = arith.constant 0 : index
    %0 = vector.load %arg5[%c0, %c0_0] : memref<64x128xf32, #tpu.memory_space<vmem>>, vector<64x128xf32>
    %c0_1 = arith.constant 0 : index
    %c0_2 = arith.constant 0 : index
    %1 = vector.load %arg6[%c0_1, %c0_2] : memref<64x128xf32, #tpu.memory_space<vmem>>, vector<64x128xf32>
    %2 = vector.extract_strided_slice %1 {offsets = [0, 0], sizes = [32, 32], strides = [1, 1]} : vector<64x128xf32> to vector<32x32xf32>
    %3 = vector.extract_strided_slice %1 {offsets = [0, 32], sizes = [32, 64], strides = [1, 1]} : vector<64x128xf32> to vector<32x64xf32>
    %4 = vector.extract_strided_slice %1 {offsets = [0, 96], sizes = [64, 32], strides = [1, 1]} : vector<64x128xf32> to vector<64x32xf32>
    %c0_3 = arith.constant 0 : index
    %c0_4 = arith.constant 0 : index
    %5 = vector.load %arg7[%c0_3, %c0_4] : memref<4x128xf32, #tpu.memory_space<vmem>>, vector<4x128xf32>
    %6 = vector.extract_strided_slice %5 {offsets = [0, 0], sizes = [1, 32], strides = [1, 1]} : vector<4x128xf32> to vector<1x32xf32>
    %7 = vector.extract_strided_slice %5 {offsets = [0, 32], sizes = [1, 32], strides = [1, 1]} : vector<4x128xf32> to vector<1x32xf32>
    %8 = vector.extract_strided_slice %5 {offsets = [0, 64], sizes = [1, 32], strides = [1, 1]} : vector<4x128xf32> to vector<1x32xf32>
    %9 = vector.extract_strided_slice %5 {offsets = [0, 96], sizes = [1, 32], strides = [1, 1]} : vector<4x128xf32> to vector<1x32xf32>
    %10 = vector.extract_strided_slice %5 {offsets = [1, 0], sizes = [1, 32], strides = [1, 1]} : vector<4x128xf32> to vector<1x32xf32>
    %11 = vector.extract_strided_slice %5 {offsets = [1, 32], sizes = [1, 32], strides = [1, 1]} : vector<4x128xf32> to vector<1x32xf32>
    %12 = vector.extract_strided_slice %5 {offsets = [1, 64], sizes = [1, 32], strides = [1, 1]} : vector<4x128xf32> to vector<1x32xf32>
    %13 = vector.extract_strided_slice %5 {offsets = [1, 96], sizes = [1, 32], strides = [1, 1]} : vector<4x128xf32> to vector<1x32xf32>
    %14 = vector.extract_strided_slice %5 {offsets = [2, 0], sizes = [1, 128], strides = [1, 1]} : vector<4x128xf32> to vector<1x128xf32>
    %15 = vector.extract_strided_slice %5 {offsets = [3, 0], sizes = [1, 64], strides = [1, 1]} : vector<4x128xf32> to vector<1x64xf32>
    %c0_5 = arith.constant 0 : index
    %c0_6 = arith.constant 0 : index
    %c0_7 = arith.constant 0 : index
    %16 = vector.load %arg2[%c0_5, %c0_6, %c0_7] : memref<1x8x32xf32, #tpu.memory_space<vmem>>, vector<1x8x32xf32>
    %17 = vector.shape_cast %16 : vector<1x8x32xf32> to vector<8x32xf32>
    %c0_8 = arith.constant 0 : index
    %c0_9 = arith.constant 0 : index
    %c0_10 = arith.constant 0 : index
    %18 = vector.load %arg3[%c0_8, %c0_9, %c0_10] : memref<1x8x32xf32, #tpu.memory_space<vmem>>, vector<1x8x32xf32>
    %19 = vector.shape_cast %18 : vector<1x8x32xf32> to vector<8x32xf32>
    %cst = arith.constant dense<0.000000e+00> : vector<8xf32>
    %20 = vector.multi_reduction <add>, %17, %cst [1] : vector<8x32xf32> to vector<8xf32>
    %21 = vector.shape_cast %20 : vector<8xf32> to vector<8x1xf32>
    %cst_11 = arith.constant 3.200000e+01 : f32
    %22 = vector.broadcast %cst_11 : f32 to vector<8x1xf32>
    %23 = arith.divf %21, %22 : vector<8x1xf32>
    %24 = vector.broadcast %23 : vector<8x1xf32> to vector<8x32xf32>
    %25 = arith.subf %17, %24 : vector<8x32xf32>
    %26 = arith.mulf %25, %25 : vector<8x32xf32>
    %cst_12 = arith.constant dense<0.000000e+00> : vector<8xf32>
    %27 = vector.multi_reduction <add>, %26, %cst_12 [1] : vector<8x32xf32> to vector<8xf32>
    %28 = vector.shape_cast %27 : vector<8xf32> to vector<8x1xf32>
    %cst_13 = arith.constant 3.200000e+01 : f32
    %29 = vector.broadcast %cst_13 : f32 to vector<8x1xf32>
    %30 = arith.divf %28, %29 : vector<8x1xf32>
    %31 = vector.broadcast %23 : vector<8x1xf32> to vector<8x32xf32>
    %32 = arith.subf %17, %31 : vector<8x32xf32>
    %cst_14 = arith.constant 9.99999996E-13 : f32
    %33 = vector.broadcast %cst_14 : f32 to vector<8x1xf32>
    %34 = arith.addf %30, %33 : vector<8x1xf32>
    %35 = math.rsqrt %34 : vector<8x1xf32>
    %36 = vector.broadcast %35 : vector<8x1xf32> to vector<8x32xf32>
    %37 = arith.mulf %32, %36 : vector<8x32xf32>
    %38 = vector.broadcast %6 : vector<1x32xf32> to vector<8x32xf32>
    %39 = arith.mulf %37, %38 : vector<8x32xf32>
    %40 = vector.broadcast %10 : vector<1x32xf32> to vector<8x32xf32>
    %41 = arith.addf %39, %40 : vector<8x32xf32>
    %cst_15 = arith.constant dense<0.000000e+00> : vector<8xf32>
    %42 = vector.multi_reduction <add>, %19, %cst_15 [1] : vector<8x32xf32> to vector<8xf32>
    %43 = vector.shape_cast %42 : vector<8xf32> to vector<8x1xf32>
    %cst_16 = arith.constant 3.200000e+01 : f32
    %44 = vector.broadcast %cst_16 : f32 to vector<8x1xf32>
    %45 = arith.divf %43, %44 : vector<8x1xf32>
    %46 = vector.broadcast %45 : vector<8x1xf32> to vector<8x32xf32>
    %47 = arith.subf %19, %46 : vector<8x32xf32>
    %48 = arith.mulf %47, %47 : vector<8x32xf32>
    %cst_17 = arith.constant dense<0.000000e+00> : vector<8xf32>
    %49 = vector.multi_reduction <add>, %48, %cst_17 [1] : vector<8x32xf32> to vector<8xf32>
    %50 = vector.shape_cast %49 : vector<8xf32> to vector<8x1xf32>
    %cst_18 = arith.constant 3.200000e+01 : f32
    %51 = vector.broadcast %cst_18 : f32 to vector<8x1xf32>
    %52 = arith.divf %50, %51 : vector<8x1xf32>
    %53 = vector.broadcast %45 : vector<8x1xf32> to vector<8x32xf32>
    %54 = arith.subf %19, %53 : vector<8x32xf32>
    %cst_19 = arith.constant 9.99999996E-13 : f32
    %55 = vector.broadcast %cst_19 : f32 to vector<8x1xf32>
    %56 = arith.addf %52, %55 : vector<8x1xf32>
    %57 = math.rsqrt %56 : vector<8x1xf32>
    %58 = vector.broadcast %57 : vector<8x1xf32> to vector<8x32xf32>
    %59 = arith.mulf %54, %58 : vector<8x32xf32>
    %60 = vector.broadcast %7 : vector<1x32xf32> to vector<8x32xf32>
    %61 = arith.mulf %59, %60 : vector<8x32xf32>
    %62 = vector.broadcast %11 : vector<1x32xf32> to vector<8x32xf32>
    %63 = arith.addf %61, %62 : vector<8x32xf32>
    %64 = tpu.concatenate %41, %63 in 1 : vector<8x32xf32>, vector<8x32xf32> -> vector<8x64xf32>
    %cst_20 = arith.constant dense<0.000000e+00> : vector<8x128xf32>
    %65 = tpu.matmul %64, %0, %cst_20 {dimension_numbers = #tpu.dot_dimension_numbers<[1], [0], [0], [1], [0, 0, 1, 1], [], []>} : vector<8x64xf32>, vector<64x128xf32>, vector<8x128xf32> -> vector<8x128xf32>
    %66 = vector.broadcast %14 : vector<1x128xf32> to vector<8x128xf32>
    %67 = arith.addf %65, %66 : vector<8x128xf32>
    %68 = vector.extract_strided_slice %67 {offsets = [0, 0], sizes = [8, 32], strides = [1, 1]} : vector<8x128xf32> to vector<8x32xf32>
    %69 = vector.extract_strided_slice %67 {offsets = [0, 32], sizes = [8, 32], strides = [1, 1]} : vector<8x128xf32> to vector<8x32xf32>
    %70 = vector.extract_strided_slice %67 {offsets = [0, 64], sizes = [8, 32], strides = [1, 1]} : vector<8x128xf32> to vector<8x32xf32>
    %71 = vector.shape_cast %68 : vector<8x32xf32> to vector<1x8x4x8xf32>
    %72 = tpu.transpose %71, [0, 2, 1, 3] : vector<1x8x4x8xf32> -> vector<1x4x8x8xf32>
    %73 = vector.shape_cast %72 : vector<1x4x8x8xf32> to vector<4x8x8xf32>
    %74 = vector.shape_cast %69 : vector<8x32xf32> to vector<1x8x4x8xf32>
    %75 = tpu.transpose %74, [0, 2, 1, 3] : vector<1x8x4x8xf32> -> vector<1x4x8x8xf32>
    %76 = vector.shape_cast %75 : vector<1x4x8x8xf32> to vector<4x8x8xf32>
    %77 = vector.shape_cast %70 : vector<8x32xf32> to vector<1x8x4x8xf32>
    %78 = tpu.transpose %77, [0, 2, 1, 3] : vector<1x8x4x8xf32> -> vector<1x4x8x8xf32>
    %79 = vector.shape_cast %78 : vector<1x4x8x8xf32> to vector<4x8x8xf32>
    %c0_21 = arith.constant 0 : index
    %c0_22 = arith.constant 0 : index
    %c0_23 = arith.constant 0 : index
    %80 = vector.load %arg4[%c0_21, %c0_22, %c0_23] : memref<1x1x8xf32, #tpu.memory_space<vmem>>, vector<1x1x8xf32>
    %cst_24 = arith.constant 0.000000e+00 : f32
    %81 = vector.broadcast %cst_24 : f32 to vector<1x1x8xf32>
    %82 = arith.cmpf ogt, %80, %81 : vector<1x1x8xf32>
    %cst_25 = arith.constant 0.000000e+00 : f32
    %cst_26 = arith.constant -1.000000e+30 : f32
    %83 = vector.broadcast %cst_25 : f32 to vector<1x1x8xf32>
    %84 = vector.broadcast %cst_26 : f32 to vector<1x1x8xf32>
    %85 = arith.select %82, %83, %84 : vector<1x1x8xi1>, vector<1x1x8xf32>
    %86 = vector.shape_cast %85 : vector<1x1x8xf32> to vector<1x1x1x8xf32>
    %cst_27 = arith.constant dense<0xFF800000> : vector<1x1xf32>
    %87 = vector.multi_reduction <maximumf>, %80, %cst_27 [2] : vector<1x1x8xf32> to vector<1x1xf32>
    %88 = vector.shape_cast %87 : vector<1x1xf32> to vector<1x1x1xf32>
    %cst_28 = arith.constant 0.000000e+00 : f32
    %89 = vector.broadcast %cst_28 : f32 to vector<1x1x1xf32>
    %90 = arith.cmpf ogt, %88, %89 : vector<1x1x1xf32>
    %91 = arith.extui %90 : vector<1x1x1xi1> to vector<1x1x1xi32>
    %92 = arith.sitofp %91 : vector<1x1x1xi32> to vector<1x1x1xf32>
    %93 = vector.shape_cast %92 : vector<1x1x1xf32> to vector<1x1x1x1xf32>
    "tpu.trace_start"() <{level = 10 : i32, message = "zqd,zkd->zqk"}> : () -> ()
    %cst_29 = arith.constant dense<0.000000e+00> : vector<4x8x8xf32>
    %94 = tpu.matmul %73, %76, %cst_29 {dimension_numbers = #tpu.dot_dimension_numbers<[2], [2], [1], [1], [0, 0, 0, 1, 1, 1], [0], [0]>} : vector<4x8x8xf32>, vector<4x8x8xf32>, vector<4x8x8xf32> -> vector<4x8x8xf32>
    "tpu.trace_stop"() : () -> ()
    %95 = vector.shape_cast %94 : vector<4x8x8xf32> to vector<1x4x8x8xf32>
    %96 = vector.broadcast %86 : vector<1x1x1x8xf32> to vector<1x4x8x8xf32>
    %97 = arith.addf %95, %96 : vector<1x4x8x8xf32>
    %cst_30 = arith.constant dense<0xFF800000> : vector<1x4x8xf32>
    %98 = vector.multi_reduction <maximumf>, %97, %cst_30 [3] : vector<1x4x8x8xf32> to vector<1x4x8xf32>
    %99 = vector.shape_cast %98 : vector<1x4x8xf32> to vector<1x4x8x1xf32>
    %100 = vector.broadcast %99 : vector<1x4x8x1xf32> to vector<1x4x8x8xf32>
    %101 = arith.subf %97, %100 : vector<1x4x8x8xf32>
    %102 = math.exp %101 : vector<1x4x8x8xf32>
    %cst_31 = arith.constant dense<0.000000e+00> : vector<1x4x8xf32>
    %103 = vector.multi_reduction <add>, %102, %cst_31 [3] : vector<1x4x8x8xf32> to vector<1x4x8xf32>
    %104 = vector.shape_cast %103 : vector<1x4x8xf32> to vector<1x4x8x1xf32>
    %105 = tpu.reciprocal %104 {approx = true} : vector<1x4x8x1xf32> -> vector<1x4x8x1xf32>
    %106 = arith.mulf %104, %105 : vector<1x4x8x1xf32>
    %cst_32 = arith.constant 2.000000e+00 : f32
    %107 = vector.broadcast %cst_32 : f32 to vector<1x4x8x1xf32>
    %108 = arith.subf %107, %106 : vector<1x4x8x1xf32>
    %109 = arith.mulf %105, %108 : vector<1x4x8x1xf32>
    %110 = vector.broadcast %93 : vector<1x1x1x1xf32> to vector<1x4x8x1xf32>
    %111 = arith.mulf %109, %110 : vector<1x4x8x1xf32>
    %112 = vector.broadcast %111 : vector<1x4x8x1xf32> to vector<1x4x8x8xf32>
    %113 = arith.mulf %102, %112 : vector<1x4x8x8xf32>
    %114 = vector.shape_cast %113 : vector<1x4x8x8xf32> to vector<4x8x8xf32>
    "tpu.trace_start"() <{level = 10 : i32, message = "zqk,zkd->zqd"}> : () -> ()
    %cst_33 = arith.constant dense<0.000000e+00> : vector<4x8x8xf32>
    %115 = tpu.matmul %114, %79, %cst_33 {dimension_numbers = #tpu.dot_dimension_numbers<[2], [1], [1], [2], [0, 0, 0, 1, 1, 2], [0], [0]>} : vector<4x8x8xf32>, vector<4x8x8xf32>, vector<4x8x8xf32> -> vector<4x8x8xf32>
    "tpu.trace_stop"() : () -> ()
    %116 = vector.shape_cast %115 : vector<4x8x8xf32> to vector<1x4x8x8xf32>
    %117 = tpu.transpose %116, [0, 2, 1, 3] : vector<1x4x8x8xf32> -> vector<1x8x4x8xf32>
    %118 = vector.shape_cast %117 : vector<1x8x4x8xf32> to vector<8x32xf32>
    %cst_34 = arith.constant dense<0.000000e+00> : vector<8x32xf32>
    %119 = tpu.matmul %118, %2, %cst_34 {dimension_numbers = #tpu.dot_dimension_numbers<[1], [0], [0], [1], [0, 0, 1, 1], [], []>} : vector<8x32xf32>, vector<32x32xf32>, vector<8x32xf32> -> vector<8x32xf32>
    %120 = vector.broadcast %9 : vector<1x32xf32> to vector<8x32xf32>
    %121 = arith.addf %119, %120 : vector<8x32xf32>
    %122 = arith.addf %19, %121 : vector<8x32xf32>
    %cst_35 = arith.constant dense<0.000000e+00> : vector<8xf32>
    %123 = vector.multi_reduction <add>, %122, %cst_35 [1] : vector<8x32xf32> to vector<8xf32>
    %124 = vector.shape_cast %123 : vector<8xf32> to vector<8x1xf32>
    %cst_36 = arith.constant 3.200000e+01 : f32
    %125 = vector.broadcast %cst_36 : f32 to vector<8x1xf32>
    %126 = arith.divf %124, %125 : vector<8x1xf32>
    %127 = vector.broadcast %126 : vector<8x1xf32> to vector<8x32xf32>
    %128 = arith.subf %122, %127 : vector<8x32xf32>
    %129 = arith.mulf %128, %128 : vector<8x32xf32>
    %cst_37 = arith.constant dense<0.000000e+00> : vector<8xf32>
    %130 = vector.multi_reduction <add>, %129, %cst_37 [1] : vector<8x32xf32> to vector<8xf32>
    %131 = vector.shape_cast %130 : vector<8xf32> to vector<8x1xf32>
    %cst_38 = arith.constant 3.200000e+01 : f32
    %132 = vector.broadcast %cst_38 : f32 to vector<8x1xf32>
    %133 = arith.divf %131, %132 : vector<8x1xf32>
    %134 = vector.broadcast %126 : vector<8x1xf32> to vector<8x32xf32>
    %135 = arith.subf %122, %134 : vector<8x32xf32>
    %cst_39 = arith.constant 9.99999996E-13 : f32
    %136 = vector.broadcast %cst_39 : f32 to vector<8x1xf32>
    %137 = arith.addf %133, %136 : vector<8x1xf32>
    %138 = math.rsqrt %137 : vector<8x1xf32>
    %139 = vector.broadcast %138 : vector<8x1xf32> to vector<8x32xf32>
    %140 = arith.mulf %135, %139 : vector<8x32xf32>
    %141 = vector.broadcast %8 : vector<1x32xf32> to vector<8x32xf32>
    %142 = arith.mulf %140, %141 : vector<8x32xf32>
    %143 = vector.broadcast %12 : vector<1x32xf32> to vector<8x32xf32>
    %144 = arith.addf %142, %143 : vector<8x32xf32>
    %cst_40 = arith.constant dense<0.000000e+00> : vector<8x64xf32>
    %145 = tpu.matmul %144, %3, %cst_40 {dimension_numbers = #tpu.dot_dimension_numbers<[1], [0], [0], [1], [0, 0, 1, 1], [], []>} : vector<8x32xf32>, vector<32x64xf32>, vector<8x64xf32> -> vector<8x64xf32>
    %146 = vector.broadcast %15 : vector<1x64xf32> to vector<8x64xf32>
    %147 = arith.addf %145, %146 : vector<8x64xf32>
    %cst_41 = arith.constant 0.000000e+00 : f32
    %148 = vector.broadcast %cst_41 : f32 to vector<8x64xf32>
    %149 = arith.maximumf %147, %148 : vector<8x64xf32>
    %cst_42 = arith.constant dense<0.000000e+00> : vector<8x32xf32>
    %150 = tpu.matmul %149, %4, %cst_42 {dimension_numbers = #tpu.dot_dimension_numbers<[1], [0], [0], [1], [0, 0, 1, 1], [], []>} : vector<8x64xf32>, vector<64x32xf32>, vector<8x32xf32> -> vector<8x32xf32>
    %151 = vector.broadcast %13 : vector<1x32xf32> to vector<8x32xf32>
    %152 = arith.addf %150, %151 : vector<8x32xf32>
    %153 = arith.addf %122, %152 : vector<8x32xf32>
    %154 = vector.shape_cast %153 : vector<8x32xf32> to vector<1x8x32xf32>
    %c0_43 = arith.constant 0 : index
    %c0_44 = arith.constant 0 : index
    %c0_45 = arith.constant 0 : index
    %155 = vector.load %arg8[%c0_43, %c0_44, %c0_45] : memref<1x8x32xf32, #tpu.memory_space<vmem>>, vector<1x8x32xf32>
    tpu.vector_store %arg8[%c0_43, %c0_44, %c0_45], %154 {strides = array<i32>} : memref<1x8x32xf32, #tpu.memory_space<vmem>>, vector<1x8x32xf32>,
    return
  }
  func.func @transform_0(%arg0: i32, %arg1: i32) -> (i32, i32, i32) {
    %c0_i32 = arith.constant 0 : i32
    %c0_i32_0 = arith.constant 0 : i32
    return %arg0, %arg1, %c0_i32 : i32, i32, i32
  }
  func.func @transform_1(%arg0: i32, %arg1: i32) -> (i32, i32, i32) {
    %c0_i32 = arith.constant 0 : i32
    %c0_i32_0 = arith.constant 0 : i32
    %c0_i32_1 = arith.constant 0 : i32
    return %arg0, %c0_i32, %c0_i32_0 : i32, i32, i32
  }
  func.func @transform_2(%arg0: i32, %arg1: i32) -> (i32, i32, i32) {
    %c0_i32 = arith.constant 0 : i32
    %c0_i32_0 = arith.constant 0 : i32
    %c0_i32_1 = arith.constant 0 : i32
    return %arg0, %c0_i32, %c0_i32_0 : i32, i32, i32
  }
  func.func @transform_3(%arg0: i32, %arg1: i32) -> (i32, i32) {
    %c0_i32 = arith.constant 0 : i32
    %c0_i32_0 = arith.constant 0 : i32
    %c0_i32_1 = arith.constant 0 : i32
    return %c0_i32, %c0_i32_0 : i32, i32
  }
  func.func @transform_4(%arg0: i32, %arg1: i32) -> (i32, i32) {
    %c0_i32 = arith.constant 0 : i32
    %c0_i32_0 = arith.constant 0 : i32
    %c0_i32_1 = arith.constant 0 : i32
    return %c0_i32, %c0_i32_0 : i32, i32
  }
  func.func @transform_5(%arg0: i32, %arg1: i32) -> (i32, i32) {
    %c0_i32 = arith.constant 0 : i32
    %c0_i32_0 = arith.constant 0 : i32
    %c0_i32_1 = arith.constant 0 : i32
    return %c0_i32, %c0_i32_0 : i32, i32
  }
  func.func @transform_6(%arg0: i32, %arg1: i32) -> (i32, i32, i32) {
    %c0_i32 = arith.constant 0 : i32
    %c0_i32_0 = arith.constant 0 : i32
    return %arg0, %arg1, %c0_i32 : i32, i32, i32
  }
}

</mosaic_0001>

<bundles_post_ra>
// kernel: tpu_custom_call.1
= control target key start
LH: loop header
LB: loop body
LE: loop exit
PB: predicated region body
PF: predicated region fallthrough
CT: control target
= control target key end

     0   :  { %s3441_s0 = inlined_call_operand.hbm [shape: f32[2,8,32], index: 0, kind: input, shape index: {}]   ;;  %s3442_s1 = inlined_call_operand.hbm [shape: f32[2,8,32], index: 1, kind: input, shape index: {}]   ;;  %s3443_s2 = inlined_call_operand.vmem [shape: f32[2,1,8], index: 2, kind: input, shape index: {}]   ;;  %s3444_s3 = inlined_call_operand.hbm [shape: f32[64,128], index: 3, kind: input, shape index: {}]   ;;  %s3445_s4 = inlined_call_operand.hbm [shape: f32[64,128], index: 4, kind: input, shape index: {}]   ;;  %s3446_s5 = inlined_call_operand.vmem [shape: f32[4,128], index: 5, kind: input, shape index: {}]   ;;  %s3447_s6 = inlined_call_operand.hbm [shape: f32[2,8,32], index: 6, kind: output, shape index: {}]  }
   0x1   :  { %3454 = sst [smem:[#allocation19_spill]] %s3444_s3 }
   0x2   :  { %3455 = sst [smem:[#allocation20_spill]] %s3445_s4 }
   0x3   :  { %11 = vsyncpa [#allocation3], 0 }
   0x4   :  { %13 = vsyncpa [#allocation3 + $0x1], 0 }
   0x5   :  { %14 = vsyncpa [#allocation6], 0 }
   0x6   :  { %16 = vsyncpa [#allocation6 + $0x1], 0 }
   0x7   :  { %17 = vsyncpa [#allocation9], 0 }
   0x8   :  { %18 = vsyncpa [#allocation4], 0 }
   0x9   :  { %20 = vsyncpa [#allocation4 + $0x1], 0  ;;  %s2885_s21 = smov 0   ;;  %s2887_s22 = smov 0  }
   0xa   :  { %s2889_s23 = smov 0   ;;  %s2891_s24 = smov 0  }
   0xb   :  { %s2893_s25 = smov 0   ;;  %s2895_s26 = smov 0  }
   0xc LB: > { %3456 = sst [smem:[#allocation16_spill]] %s2822_s25  ;;  %s2916_s27 = sadd.s32 4294967295, %s2826_s26   ;;  %s2826_s26 = sphi %s2895_s26, %s26_s26   ;;  %s2822_s25 = sphi %s2893_s25, %s3479_s25   ;;  %s2818_s24 = sphi %s2891_s24, %s3478_s24   ;;  %s2814_s23 = sphi %s2889_s23, %s3482_s23   ;;  %s2810_s22 = sphi %s2887_s22, %s3481_s22   ;;  %s2806_s21 = sphi %s2885_s21, %s3480_s21  }
   0xd   : > { %s2235_s28 = sadd.s32 4294967294, %s2826_s26   ;;  %p60_p0 = scmp.ne.s32.totalorder %s2810_s22, %s2806_s21 }
   0xe   : > { %p3448_p1 = scmp.eq.s32.totalorder %s2916_s27, 0  ;;  %p207_p3 = scmp.eq.s32.totalorder %s2235_s28, 1 }
   0xf   : > { %p2236_p5 = scmp.ge.s32.totalorder %s2826_s26, 1  ;;  %p214_p7 = scmp.lt.s32.totalorder %s2826_s26, 3 }
  0x10   : > { %p2925_p4 = por %p3448_p1, %p60_p0  ;;  %p2930_p6 = por %p207_p3, %p60_p0 }
  0x11   : > { %p2935_p8 = pnand %p2236_p5, %p214_p7  ;;  %s2828_s8 = smov [#allocation7]  }
  0x12   : > { %s3457_s29 = scalar_select %p2925_p4, 1, 0 }
  0x13   : > { %s3458_s30 = scalar_select %p2930_p6, 1, 0 }
  0x14   : > { %s3459_s7 = scalar_select %p2935_p8, 1, 0 }
  0x15   : > { %s226_s9 = sshll.u32 %s2828_s8, 4  ;;  %p2473_p9 = pneg %p2935_p8  ;;  %s2939_s9 = int_to_ptr.vmem [resolvable:$true] %s226_s9 }
  0x16   : > { %s2829_s11 = smov [#allocation8]   ;;  %s3461_s3 = sld [smem:[#allocation19_spill]] }
  0x17   : > { %p2946_p11 = pnand %p2473_p9, %p3448_p1  ;;  %s239_s12 = sshll.u32 %s2829_s11, 4  ;;  %s2950_s12 = int_to_ptr.vmem [resolvable:$true] %s239_s12 }
  0x19   : > { %p2618_p13 = pneg %p2946_p11 }
  0x1c   : > { %s2616_s15 = scalar_lea.hbm %s3461_s3, 1024 }
  0x1d   : > { %p2617_p12 = scmp.ne.s32.totalorder %s3461_s3, %s2616_s15  ;;  %p2623_p5 = scmp.lt.u32.totalorder %s2616_s15, %s3461_s3 }
  0x1f   : > { %p2619_p0 = pnand %p2618_p13, %p2617_p12 }
  0x21   : > { %p2620_p3 = pneg %p2619_p0 }
  0x23   : > { %p2625_p7 = pnand %p2623_p5, %p2620_p3 }
  0x25   : > { %2628 = shalt.err (!%p2625_p7)
}
  0x26   : > { %s2629_s20 = scalar_lea.vmem %s2939_s9, 1024  ;;  %p2637_p2 = scmp.lt.s32.totalorder %s2939_s9, %s2939_s9 }
  0x27   : > { %p2630_p9 = scmp.ne.s32.totalorder %s2939_s9, %s2629_s20  ;;  %p2638_p12 = scmp.lt.s32.totalorder %s2629_s20, %s2629_s20 }
  0x29   : > { %p2632_p10 = pnand %p2630_p9, %p2618_p13  ;;  %p2639_p0 = por %p2638_p12, %p2637_p2 }
  0x2b   : > { %p2633_p1 = pneg %p2632_p10 }
  0x2d   : > { %p2640_p6 = pnand %p2639_p0, %p2633_p1 }
  0x2f   : > { %2643 = shalt.err (!%p2640_p6)
}
  0x30   : > { %s2830_s28 = smov 128   ;;  %s2831_s8 = smov 8  }
  0x31   : > { %2476 = dma.hbm_to_vmem [thread:$0]  (!%p2946_p11), %s3461_s3, 1024, %s2939_s9, [#allocation6], %s2830_s28, %s2830_s28, %s2831_s8  }
  0x32   : > { %s3462_s4 = sld [smem:[#allocation20_spill]] }
  0x38   : > { %s2644_s16 = scalar_lea.hbm %s3462_s4, 1024 }
  0x39   : > { %p2645_p2 = scmp.ne.s32.totalorder %s3462_s4, %s2644_s16  ;;  %p2651_p10 = scmp.lt.u32.totalorder %s2644_s16, %s3462_s4 }
  0x3b   : > { %p2647_p1 = pnand %p2645_p2, %p2618_p13 }
  0x3d   : > { %p2648_p6 = pneg %p2647_p1 }
  0x3f   : > { %p2653_p3 = pnand %p2651_p10, %p2648_p6 }
  0x41   : > { %2656 = shalt.err (!%p2653_p3)
}
  0x42   : > { %s2657_s9 = scalar_lea.vmem %s2950_s12, 1024  ;;  %p2665_p12 = scmp.lt.s32.totalorder %s2950_s12, %s2950_s12 }
  0x43   : > { %p2658_p5 = scmp.ne.s32.totalorder %s2950_s12, %s2657_s9  ;;  %p2666_p0 = scmp.lt.s32.totalorder %s2657_s9, %s2657_s9 }
  0x45   : > { %p2660_p7 = pnand %p2658_p5, %p2618_p13  ;;  %p2667_p2 = por %p2666_p0, %p2665_p12 }
  0x47   : > { %p2661_p9 = pneg %p2660_p7 }
  0x49   : > { %p2668_p1 = pnand %p2667_p2, %p2661_p9 }
  0x4b   : > { %2671 = shalt.err (!%p2668_p1)
}
  0x4c   : > { %2479 = dma.hbm_to_vmem [thread:$0]  (!%p2946_p11), %s3462_s4, 1024, %s2950_s12, [#allocation9], %s2830_s28, %s2830_s28, %s2831_s8  }
  0x4d   : > { %s38_s14 = sadd.s32 1, %s2822_s25  ;;  %s47_s15 = sadd.s32 1, %s2814_s23 }
  0x4e   : > { %p40_p13 = scmp.ge.s32.totalorder %s38_s14, 2  ;;  %p54_p6 = scmp.ne.s32.totalorder %s2814_s23, %s2810_s22 }
  0x4f   : > { %p55_p10 = scmp.eq.s32.totalorder %s2826_s26, 0  ;;  %p2493_p3 = scmp.lt.s32.totalorder %s2826_s26, 2 }
  0x50   : > { %s3484_s14 = smov (%p40_p13, %s38_s14), 0  ;;  %p3464_p7 = scmp.eq.s32.totalorder %s2916_s27, 1 }
  0x51   : > { %3463 = sst [smem:[#allocation17_spill]] %s3484_s14  ;;  %p56_p5 = por %p55_p10, %p54_p6 }
  0x52   : > { %p3014_p9 = por %p3464_p7, %p54_p6  ;;  %s42_s16 = ssub.s32 %s2822_s25, %s3484_s14 }
  0x53   : > { %s256_s17 = sand.u32 1, %s2814_s23   ;;  %p45_p12 = scmp.eq.s32.totalorder %s42_s16, 0 }
  0x54   : > { %s3465_s10 = scalar_select %p3014_p9, 1, 0 }
  0x55   : > { %s3021_s12 = sshll.u32 %s256_s17, 3  ;;  %s2241_s28 = sshll.u32 %s2822_s25, 7 }
  0x56   : > { %s3025_s8 = scalar_select %p45_p12, %s2814_s23, %s47_s15  }
  0x57   : > { %s3030_s20 = scalar_lea.hbm %s3441_s0, %s2241_s28  ;;  %s260_s9 = scalar_lea.vmem [#allocation2], %s3021_s12 }
  0x58   : > { %3466 = sst [smem:[#allocation18_spill]] %s3025_s8  ;;  %s268_s11 = sshll.u32 %s260_s9, 4  ;;  %s3039_s11 = int_to_ptr.vmem [resolvable:$true] %s268_s11 }
  0x59   : > { %p3035_p11 = pnand %p2493_p3, %p56_p5  ;;  %s3044_s18 = scalar_lea.hbm %s3442_s1, %s2241_s28 }
  0x5a   : > { %s257_s19 = scalar_lea.sflag [#allocation3], %s256_s17  ;;  %s2672_s3 = scalar_lea.hbm %s3030_s20, 128 }
  0x5b   : > { %p2673_p0 = scmp.ne.s32.totalorder %s3030_s20, %s2672_s3  ;;  %p2674_p2 = pneg %p3035_p11 }
  0x5c   : > { %s2677_s14 = scalar_lea.hbm %s3441_s0, 256  ;;  %p2678_p6 = scmp.lt.u32.totalorder %s3030_s20, %s3441_s0 }
  0x5d   : > { %p2675_p1 = pnand %p2674_p2, %p2673_p0  ;;  %p2679_p10 = scmp.lt.u32.totalorder %s2677_s14, %s2672_s3 }
  0x5e   : > { %p2681_p5 = scmp.lt.u32.totalorder %s2672_s3, %s3030_s20 }
  0x5f   : > { %p2676_p13 = pneg %p2675_p1  ;;  %p2680_p3 = por %p2679_p10, %p2678_p6 }
  0x61   : > { %p2682_p7 = por %p2681_p5, %p2680_p3 }
  0x63   : > { %p2683_p12 = pnand %p2682_p7, %p2676_p13 }
  0x65   : > { %2686 = shalt.err (!%p2683_p12)
}
  0x66   : > { %s2687_s17 = scalar_lea.vmem %s3039_s11, 128  ;;  %s2832_s4 = smov [#allocation2]  }
  0x67   : > { %p2688_p0 = scmp.ne.s32.totalorder %s3039_s11, %s2687_s17  ;;  %s2692_s28 = sshll.u32 %s2832_s4, 4  ;;  %s2693_s28 = int_to_ptr.vmem [resolvable:$false] %s2692_s28 }
  0x68   : > { %s2694_s25 = scalar_lea.vmem %s2693_s28, 256  ;;  %p2695_p4 = scmp.lt.s32.totalorder %s3039_s11, %s2693_s28 }
  0x69   : > { %p2690_p1 = pnand %p2688_p0, %p2674_p2  ;;  %p2696_p6 = scmp.lt.s32.totalorder %s2694_s25, %s2687_s17 }
  0x6b   : > { %p2691_p9 = pneg %p2690_p1  ;;  %p2697_p10 = por %p2696_p6, %p2695_p4 }
  0x6d   : > { %p2698_p3 = pnand %p2697_p10, %p2691_p9 }
  0x6f   : > { %2701 = shalt.err (!%p2698_p3)
}
  0x70   : > { %2483 = dma.hbm_to_vmem [thread:$0]  (!%p3035_p11), %s3030_s20, 128, %s3039_s11, %s257_s19  }
  0x71   : > { %s275_s3 = sand.u32 1, %s2826_s26   ;;  %s279_s14 = scalar_lea.vmem [#allocation5], %s3021_s12 }
  0x72   : > { %s286_s8 = sshll.u32 %s279_s14, 4  ;;  %s276_s15 = scalar_lea.sflag [#allocation6], %s275_s3  ;;  %s287_s8 = int_to_ptr.vmem [resolvable:$true] %s286_s8 }
  0x73   : > { %s2702_s16 = scalar_lea.hbm %s3044_s18, 128  ;;  %s2707_s4 = scalar_lea.hbm %s3442_s1, 256 }
  0x74   : > { %p2703_p4 = scmp.ne.s32.totalorder %s3044_s18, %s2702_s16  ;;  %p2708_p5 = scmp.lt.u32.totalorder %s3044_s18, %s3442_s1 }
  0x75   : > { %p2709_p7 = scmp.lt.u32.totalorder %s2707_s4, %s2702_s16  ;;  %p2711_p0 = scmp.lt.u32.totalorder %s2702_s16, %s3044_s18 }
  0x76   : > { %p2705_p9 = pnand %p2703_p4, %p2674_p2 }
  0x77   : > { %p2710_p12 = por %p2709_p7, %p2708_p5 }
  0x78   : > { %p2706_p13 = pneg %p2705_p9 }
  0x79   : > { %p2712_p1 = por %p2711_p0, %p2710_p12 }
  0x7b   : > { %p2713_p6 = pnand %p2712_p1, %p2706_p13 }
  0x7d   : > { %2716 = shalt.err (!%p2713_p6)
}
  0x7e   : > { %s2717_s12 = scalar_lea.vmem %s287_s8, 128  ;;  %s2833_s20 = smov [#allocation5]  }
  0x7f   : > { %p2718_p10 = scmp.ne.s32.totalorder %s287_s8, %s2717_s12  ;;  %s2722_s11 = sshll.u32 %s2833_s20, 4  ;;  %s2723_s11 = int_to_ptr.vmem [resolvable:$false] %s2722_s11 }
  0x80   : > { %s2724_s19 = scalar_lea.vmem %s2723_s11, 256  ;;  %p2725_p9 = scmp.lt.s32.totalorder %s287_s8, %s2723_s11 }
  0x81   : > { %p2720_p3 = pnand %p2718_p10, %p2674_p2  ;;  %p2726_p8 = scmp.lt.s32.totalorder %s2724_s19, %s2717_s12 }
  0x83   : > { %p2721_p4 = pneg %p2720_p3  ;;  %p2727_p5 = por %p2726_p8, %p2725_p9 }
  0x85   : > { %p2728_p7 = pnand %p2727_p5, %p2721_p4 }
  0x87   : > { %2731 = shalt.err (!%p2728_p7)
}
  0x88   : > { %2486 = dma.hbm_to_vmem [thread:$0]  (!%p3035_p11), %s3044_s18, 128, %s287_s8, %s276_s15  }
  0x89   : > { %p3468_p13 = scmp.ne.s32.totalorder %s3459_s7, 0 }
  0x8a   : > { %s3095_s3 = sand.u32 (!%p3468_p13), 1, %s2810_s22   ;;  %p3469_p8 = scmp.ne.s32.totalorder (!%p3468_p13), %s3457_s29, 0 }
  0x8b   : > { %301 = sbr.rel (%p3468_p13) target bundleno = 2939 (0xb7b), region = 44  ;;  %s3098_s14 = sshll.u32 (!%p3468_p13), %s3095_s3, 3 }
  0x8c   : > { %s304_s16 = scalar_lea.sflag (!%p3468_p13), [#allocation3], %s3095_s3  ;;  %s307_s9 = scalar_lea.vmem (!%p3468_p13), [#allocation2], %s3098_s14 }
  0x92   : > { %2785 = dma.done.wait (%p3469_p8), %s304_s16, 128  }
  0x93   : > { %2787 = vsyncadd (%p3469_p8), %s304_s16, 4294967168  ;;  %s312_s7 = sand.u32 1, %s2916_s27   ;;  %s316_s18 = scalar_lea.vmem [#allocation5], %s3098_s14 }
  0x94   : > { %s313_s13 = scalar_lea.sflag [#allocation6], %s312_s7 }
  0x95   : > { %2789 = dma.done.wait (%p3469_p8), %s313_s13, 128  }
  0x96   : > { %2791 = vsyncadd (%p3469_p8), %s313_s13, 4294967168  ;;  %p3470_p11 = scmp.eq.s32.totalorder %s2916_s27, 0 }
  0x98   : > { %2793 = dma.done.wait (%p3470_p11), [#allocation6], 1024   ;;  %p3471_p2 = pmov %p3470_p11 }
  0x9a   : > { %2795 = vsyncadd (%p3471_p2), [#allocation6], 4294966272  ;;  %p3472_p12 = pmov %p3471_p2 }
  0x9b   : > { %p3473_p0 = pmov %p3471_p2 }
  0x9c   : > { %2797 = dma.done.wait (%p3472_p12), [#allocation9], 1024  }
  0x9d   : > { %2799 = vsyncadd (%p3473_p0), [#allocation9], 4294966272  ;;  %vm383_vm0 = vcmask 261120   ;;  %v3120_v0 = vld [vmem:[%s316_s18] sm:$0xff]  ;;  %v381_v1 = vld [vmem:[%s307_s9] sm:$0xff]  ;;  %v398_v4 = vlaneseq  ;;  %s2834_s27 = smov 96  }
  0x9e   : > { %v408_v2 = vsel %vm383_vm0, %v3120_v0, 0.0  ;;  %v384_v3 = vsel %vm383_vm0, %v381_v1, 0.0  ;;  %v3131_v7 = vld [vmem:[%s3446_s5] sm:$0xf]  ;;  %v365_v22 = vld [vmem:[#allocation7 + $0x8] sm:$0xff]  ;;  %v366_v23 = vld [vmem:[#allocation7 + $0x10] sm:$0xff] }
  0x9f   : > { %409 = vadd.xlane.f32.xlu0 %v408_v2  ;;  %v3125_v5 = vshrl.u32 %v398_v4, 7  ;;  %v364_v21 = vld [vmem:[#allocation7] sm:$0xff]  ;;  %v2835_v24 = vmov 0.0|0.0   ;;  %v367_v26 = vld [vmem:[#allocation7 + $0x18] sm:$0xff]  ;;  %v369_v29 = vld [vmem:[#allocation7 + $0x28] sm:$0xff]  ;;  %vm2836_vm1 = vmmov 0  }
  0xa0   : > { %2423 = vmatprep.subr.bf16.mxu0 %v2835_v24  ;;  %v2424_v25 = vpack.c.bf16 %v365_v22, %v364_v21  ;;  %v2427_v27 = vpack.c.bf16 %v367_v26, %v366_v23  ;;  %v368_v28 = vld [vmem:[#allocation7 + $0x20] sm:$0xff]  ;;  %v370_v31 = vld [vmem:[#allocation7 + $0x30] sm:$0xff]  ;;  %v371_v32 = vld [vmem:[#allocation7 + $0x38] sm:$0xff]  ;;  %v2837_v37 = vmov 0.0   ;;  %s2838_s15 = smov 32   ;;  %vm440_vm2 = vcmask 523264  }
  0xa1   : > { %v405_v6 = vsub.s32 1, %v3125_v5  ;;  %v3141_v14 = vsub.s32 0, %v3125_v5  ;;  %v2430_v30 = vpack.c.bf16 %v369_v29, %v368_v28  ;;  %v2433_v33 = vpack.c.bf16 %v371_v32, %v370_v31  ;;  %2339 = vmatprep.mubr.msk.f32.mxu0 %vm2836_vm1, %v2837_v37  ;;  %2342 = vmatprep.subr.mxu1 %v2837_v37  ;;  %s2839_s17 = smov 120   ;;  %s2840_s4 = smov 112  }
  0xa2   : > { %2425 = vmatpush3.bf16.msra.mxu0 %v2424_v25  ;;  %2344 = vmatprep.mubr.msk.f32.mxu1 %vm2836_vm1, %v2837_v37  ;;  %v438_v53 = vsub.s32 2, %v3125_v5  ;;  %s2841_s28 = smov 104   ;;  %v2842_v61 = vmov 1983009808   ;;  %vm966_vm3 = vcmask 64512   ;;  %p361_p1 = scmp.lt.s32.totalorder %s2818_s24, 1 }
  0xa3   : > { %385 = vadd.xlane.f32.xlu0 %v384_v3  ;;  %v3134_v8 = vrot.slane %v3131_v7, %v405_v6  ;;  %v3145_v15 = vrot.slane %v3131_v7, %v3141_v14  ;;  %2426 = vmatprep.subr.bf16.mxu0 %v2835_v24  ;;  %v527_v62 = vunpack.c.l.s4 %v2842_v61  ;;  %vm959_vm5 = vcmask 57344   ;;  %s2845_s19 = smov 64   ;;  %s2846_s16 = smov 16  }
  0xa4   : > { %v439_v54 = vrot.slane %v3131_v7, %v438_v53  ;;  %s362_s25 = scalar_select %p361_p1, %s2818_s24, 1  ;;  %vm1786_vm7 = vcmask 130048   ;;  %vm1788_vm8 = vcmask 195584  }
  0xa5   : > { %v528_v63 = vunpack.c.0.s8 %v527_v62  ;;  %s2847_s9 = smov 8   ;;  %s2848_s7 = smov 24  }
  0xa6   : > { %2428 = vmatpush3.bf16.msra.mxu0 %v2427_v27  ;;  %s363_s11 = scalar_lea.vmem %s3443_s2, %s362_s25  ;;  %s2276_s13 = sshll.u32 %s2818_s24, 7 }
  0xa7   : > { %2429 = vmatprep.subr.bf16.mxu0 %v2835_v24  ;;  %s360_s18 = scalar_lea.vmem [#allocation10], %s3098_s14  ;;  %p3474_p10 = scmp.ne.s32.totalorder %s3465_s10, 0 }
  0xa8   : > { %s2103_s29 = sshll.u32 %s360_s18, 4  ;;  %s2849_s14 = smov [#allocation10]   ;;  %s3393_s29 = int_to_ptr.vmem [resolvable:$true] %s2103_s29 }
  0xa9   : > { %s2732_s24 = scalar_lea.vmem %s3393_s29, 128 }
  0xaa   : > { %2431 = vmatpush3.bf16.msra.mxu0 %v2430_v30  ;;  %p2733_p6 = scmp.ne.s32.totalorder %s3393_s29, %s2732_s24 }
  0xab   : > { %2432 = vmatprep.subr.bf16.mxu0 %v2835_v24 }
  0xac   : > { %p2734_p3 = pnand %p2733_p6, %p3474_p10 }
  0xae   : > { %2434 = vmatpush3.bf16.msra.mxu0 %v2433_v33  ;;  %p2735_p4 = pneg %p2734_p3 }
  0xaf   : > { %2362 = vmatprep.subr.mxu0 %v2837_v37 }
  0xb9   : > { %427 = vrot.lane.b32.xlu0 %v3134_v8, %s2834_s27 }
 0x12c   : > { %v410_v9 = vpop.xlane.xlu0 %409 }
 0x12d   : > { %v411_v10 = vmul.f32 0.03125, %v410_v9  ;;  %v3193_v9 = vsub.s32 %v528_v63, %v3125_v5 }
 0x12f   : > { %v412_v11 = vsub.f32 %v3120_v0, %v411_v10 }
 0x130   : > { %v386_v16 = vpop.xlane.xlu0 %385 }
 0x131   : > { %v413_v12 = vmul.f32 %v412_v11, %v412_v11  ;;  %v388_v17 = vmul.f32 0.03125, %v386_v16 }
 0x133   : > { %v414_v13 = vsel %vm383_vm0, %v413_v12, 0.0  ;;  %v389_v18 = vsub.f32 %v381_v1, %v388_v17  ;;  %v2843_v1 = vmov 1934713408  }
 0x134   : > { %415 = vadd.xlane.f32.xlu1 %v414_v13  ;;  %v428_v41 = vpop.permute.xlu0 %427  ;;  %v559_v2 = vunpack.c.l.s4 %v2843_v1 }
 0x135   : > { %v390_v19 = vmul.f32 %v389_v18, %v389_v18 }
 0x136   : > { %v560_v12 = vunpack.c.0.s8 %v559_v2 }
 0x137   : > { %v391_v20 = vsel %vm383_vm0, %v390_v19, 0.0 }
 0x145   : > { %422 = vrot.lane.b32.xlu1 %v3145_v15, %s2834_s27 }
 0x169   : > { %392 = vadd.xlane.f32.xlu1 %v391_v20  ;;  %v3204_v20 = vsub.s32 %v560_v12, %v3125_v5 }
 0x1c1   : > { %v416_v34 = vpop.xlane.xlu1 %415 }
 0x1c2   : > { %v417_v35 = vmul.f32 0.03125, %v416_v34 }
 0x1c4   : > { %v418_v36 = vadd.f32 1e-12, %v417_v35 }
 0x1c5   : > { %v423_v39 = vpop.permute.xlu1 %422 }
 0x1c6   : > { %2594 = vrsqrt.f32 %v418_v36 }
 0x1d0   : > { %v2595_v38 = vpop.eup %2594 }
 0x1d1   : > { %v420_v40 = vmul.f32 %v2595_v38, %v412_v11 }
 0x1d3   : > { %v425_v42 = vmul.f32 %v423_v39, %v420_v40 }
 0x1d5   : > { %v430_v43 = vadd.f32 %v428_v41, %v425_v42 }
 0x1d7   : > { %432 = vrot.lane.b32.xlu0 %v430_v43, %s2838_s15 }
 0x1f6   : > { %v393_v44 = vpop.xlane.xlu1 %392 }
 0x1f7   : > { %v394_v45 = vmul.f32 0.03125, %v393_v44 }
 0x1f9   : > { %v395_v46 = vadd.f32 1e-12, %v394_v45 }
 0x1fb   : > { %2596 = vrsqrt.f32 %v395_v46 }
 0x205   : > { %v2597_v47 = vpop.eup %2596 }
 0x206   : > { %v397_v48 = vmul.f32 %v2597_v47, %v389_v18 }
 0x208   : > { %v402_v49 = vmul.f32 %v3145_v15, %v397_v48 }
 0x20a   : > { %v407_v50 = vadd.f32 %v3134_v8, %v402_v49 }
 0x249   : > { %v433_v51 = vpop.permute.xlu0 %432 }
 0x24a   : > { %v435_v52 = vsel %vm383_vm0, %v407_v50, %v433_v51 }
 0x24b   : > { %2340 = vmatmul.mubr.msk.f32.vlgmr.msra.gmra.mrb[0].mxu0 %vm440_vm2, %v435_v52 }
 0x24c   : > { %2364 = vmatprep.mubr.msk.f32.mxu0 %vm2836_vm1, %v2837_v37 }
 0x31e   : > { %v510_v55 = vpop.f32.mrb[0].mxu0 }
 0x31f   : > { %v3169_v56 = vadd.f32 %v510_v55, %v439_v54  ;;  %v2341_v57 = vpop.f32.mrb[1].mxu0 }
 0x321   : > { %515 = vrot.lane.b32.xlu0 %v3169_v56, %s2839_s17  ;;  %s2089_s17 = scalar_lea.sflag [#allocation4], %s3095_s3 }
 0x325   : > { %518 = vrot.lane.b32.xlu0 %v3169_v56, %s2840_s4  ;;  %s2736_s4 = sshll.u32 %s2849_s14, 4  ;;  %s2737_s4 = int_to_ptr.vmem [resolvable:$false] %s2736_s4 }
 0x326   : > { %p2739_p9 = scmp.lt.s32.totalorder %s3393_s29, %s2737_s4 }
 0x329   : > { %521 = vrot.lane.b32.xlu0 %v3169_v56, %s2841_s28  ;;  %s2738_s28 = scalar_lea.vmem %s2737_s4, 256 }
 0x32a   : > { %p2740_p5 = scmp.lt.s32.totalorder %s2738_s28, %s2732_s24 }
 0x32c   : > { %p2741_p7 = por %p2740_p5, %p2739_p9 }
 0x32d   : > { %660 = vrot.lane.b32.xlu0 %v3169_v56, %s2834_s27 }
 0x32e   : > { %p2742_p13 = pnand %p2741_p7, %p2735_p4 }
 0x393   : > { %v3176_v58 = vpop.permute.xlu0 %515 }
 0x394   : > { %662 = vrot.lane.b32.xlu0 %v3176_v58, %s2834_s27 }
 0x397   : > { %v3180_v59 = vpop.permute.xlu0 %518 }
 0x398   : > { %664 = vrot.lane.b32.xlu0 %v3180_v59, %s2834_s27  ;;  %v524_v10 = vcombine.low %v3169_v56, %v3180_v59  ;;  %v525_v11 = vcombine.high %v3169_v56, %v3180_v59 }
 0x39a   : > { %v532_v18 = vrot.slane %v524_v10, %v3193_v9  ;;  %v539_v19 = vrot.slane %v525_v11, %v3193_v9 }
 0x39b   : > { %v3184_v60 = vpop.permute.xlu0 %521 }
 0x39c   : > { %666 = vrot.lane.b32.xlu1 %v3184_v60, %s2834_s27  ;;  %v540_v3 = vcombine.low %v3176_v58, %v3184_v60  ;;  %v541_v4 = vcombine.high %v3176_v58, %v3184_v60 }
 0x39e   : > { %v548_v13 = vrot.slane %v540_v3, %v3193_v9  ;;  %v555_v16 = vrot.slane %v541_v4, %v3193_v9 }
 0x39f   : > { %v661_v6 = vpop.permute.xlu0 %660 }
 0x3a0   : > { %v556_v21 = vcombine.low %v532_v18, %v548_v13  ;;  %v557_v22 = vcombine.high %v532_v18, %v548_v13  ;;  %v572_v23 = vcombine.low %v539_v19, %v555_v16  ;;  %v573_v25 = vcombine.high %v539_v19, %v555_v16 }
 0x3a2   : > { %v564_v29 = vrot.slane %v556_v21, %v3204_v20  ;;  %v571_v30 = vrot.slane %v557_v22, %v3204_v20  ;;  %v580_v31 = vrot.slane %v572_v23, %v3204_v20  ;;  %v587_v32 = vrot.slane %v573_v25, %v3204_v20 }
 0x3a4   : > { %v592_v41 = vcombine.low %v564_v29, %v571_v30  ;;  %v2251_v42 = vcombine.high %v564_v29, %v571_v30  ;;  %v608_v43 = vcombine.low %v580_v31, %v587_v32  ;;  %v2252_v44 = vcombine.high %v580_v31, %v587_v32 }
 0x3a6   : > { %v599_v53 = vrot.slane %v592_v41, %v3193_v9  ;;  %v607_v54 = vrot.slane %v2251_v42, %v3193_v9  ;;  %v615_v55 = vrot.slane %v608_v43, %v3193_v9  ;;  %v623_v57 = vrot.slane %v2252_v44, %v3193_v9 }
 0x3a8   : > { %v624_v10 = vcombine.low %v599_v53, %v607_v54  ;;  %v640_v11 = vcombine.low %v615_v55, %v623_v57  ;;  %v625_v25 = vcombine.high %v599_v53, %v607_v54 }
 0x3aa   : > { %v632_v18 = vrot.slane %v624_v10, %v3204_v20  ;;  %v648_v19 = vrot.slane %v640_v11, %v3204_v20  ;;  %v639_v32 = vrot.slane %v625_v25, %v3204_v20 }
 0x3ac   : > { %v657_v31 = vcombine.high %v632_v18, %v648_v19 }
 0x406   : > { %v663_v17 = vpop.permute.xlu0 %662 }
 0x40a   : > { %v665_v26 = vpop.permute.xlu0 %664 }
 0x40b   : > { %v672_v27 = vcombine.low %v661_v6, %v665_v26  ;;  %v673_v28 = vcombine.high %v661_v6, %v665_v26  ;;  %v641_v26 = vcombine.high %v615_v55, %v623_v57 }
 0x40d   : > { %v680_v36 = vrot.slane %v672_v27, %v3193_v9  ;;  %v687_v38 = vrot.slane %v673_v28, %v3193_v9  ;;  %v656_v27 = vcombine.low %v632_v18, %v648_v19 }
 0x40e   : > { %v667_v33 = vpop.permute.xlu1 %666 }
 0x40f   : > { %v688_v34 = vcombine.low %v663_v17, %v667_v33  ;;  %v689_v35 = vcombine.high %v663_v17, %v667_v33  ;;  %v655_v33 = vrot.slane %v641_v26, %v3204_v20 }
 0x411   : > { %v696_v39 = vrot.slane %v688_v34, %v3193_v9  ;;  %v703_v40 = vrot.slane %v689_v35, %v3193_v9  ;;  %v658_v35 = vcombine.low %v639_v32, %v655_v33 }
 0x413   : > { %v704_v45 = vcombine.low %v680_v36, %v696_v39  ;;  %v705_v46 = vcombine.high %v680_v36, %v696_v39  ;;  %v720_v47 = vcombine.low %v687_v38, %v703_v40  ;;  %v721_v48 = vcombine.high %v687_v38, %v703_v40  ;;  %v956_v39 = vld [vmem:[%s363_s11] sm:$0x1] }
 0x414   : > { %v659_v38 = vcombine.high %v639_v32, %v655_v33  ;;  %vm957_vm4 = vcmp.gt.f32.partialorder %v956_v39, 0.0  ;;  %v2844_v40 = vmov -1e+30   ;;  %v960_v54 = vsel %vm959_vm5, %v956_v39, -inf }
 0x415   : > { %v712_v49 = vrot.slane %v704_v45, %v3204_v20  ;;  %v719_v50 = vrot.slane %v705_v46, %v3204_v20  ;;  %v728_v51 = vrot.slane %v720_v47, %v3204_v20  ;;  %v735_v52 = vrot.slane %v721_v48, %v3204_v20 }
 0x416   : > { %v958_v41 = vsel %vm957_vm4, 0.0, %v2844_v40 }
 0x417   : > { %v740_v61 = vcombine.low %v712_v49, %v719_v50  ;;  %v2253_v62 = vcombine.high %v712_v49, %v719_v50  ;;  %v756_v63 = vcombine.low %v728_v51, %v735_v52  ;;  %v2254_v1 = vcombine.high %v728_v51, %v735_v52 }
 0x418   : > { %v1275_v42 = vrot.slane %v958_v41, %v3141_v14 }
 0x419   : > { %v747_v2 = vrot.slane %v740_v61, %v3193_v9  ;;  %v755_v3 = vrot.slane %v2253_v62, %v3193_v9  ;;  %v763_v4 = vrot.slane %v756_v63, %v3193_v9  ;;  %v771_v6 = vrot.slane %v2254_v1, %v3193_v9 }
 0x41b   : > { %v772_v12 = vcombine.low %v747_v2, %v755_v3  ;;  %v788_v13 = vcombine.low %v763_v4, %v771_v6  ;;  %v773_v21 = vcombine.high %v747_v2, %v755_v3  ;;  %v789_v22 = vcombine.high %v763_v4, %v771_v6 }
 0x41d   : > { %v780_v16 = vrot.slane %v772_v12, %v3204_v20  ;;  %v796_v17 = vrot.slane %v788_v13, %v3204_v20  ;;  %v787_v29 = vrot.slane %v773_v21, %v3204_v20  ;;  %v803_v30 = vrot.slane %v789_v22, %v3204_v20 }
 0x41f   : > { %v804_v23 = vcombine.low %v780_v16, %v796_v17  ;;  %v805_v28 = vcombine.high %v780_v16, %v796_v17  ;;  %v806_v34 = vcombine.low %v787_v29, %v803_v30  ;;  %v807_v36 = vcombine.high %v787_v29, %v803_v30 }
 0x421   : > { %2343 = vmatpush3.xpose.msk.msra.mxu1 %vm966_vm3, %v804_v23 }
 0x422   : > { %2347 = vmatprep.subr.mxu1 %v2837_v37 }
 0x424   : > { %2345 = vmatmul.mubr.msk.f32.vlgmr.msra.gmra.mrb[0].mxu1 %vm966_vm3, %v656_v27 }
 0x425   : > { %2348 = vmatpush3.xpose.msk.msra.mxu1 %vm966_vm3, %v805_v28  ;;  %2349 = vmatprep.mubr.msk.f32.mxu1 %vm2836_vm1, %v2837_v37 }
 0x426   : > { %2352 = vmatprep.subr.mxu1 %v2837_v37 }
 0x428   : > { %2350 = vmatmul.mubr.msk.f32.vlgmr.msra.gmra.mrb[2].mxu1 %vm966_vm3, %v657_v31 }
 0x429   : > { %2353 = vmatpush3.xpose.msk.msra.mxu1 %vm966_vm3, %v806_v34  ;;  %2354 = vmatprep.mubr.msk.f32.mxu1 %vm2836_vm1, %v2837_v37 }
 0x42a   : > { %2357 = vmatprep.subr.mxu1 %v2837_v37 }
 0x42c   : > { %2355 = vmatmul.mubr.msk.f32.vlgmr.msra.gmra.mrb[4].mxu1 %vm966_vm3, %v658_v35 }
 0x42d   : > { %2358 = vmatpush3.xpose.msk.msra.mxu1 %vm966_vm3, %v807_v36  ;;  %2359 = vmatprep.mubr.msk.f32.mxu1 %vm2836_vm1, %v2837_v37 }
 0x42e   : > { %2367 = vmatprep.subr.mxu1 %v2837_v37 }
 0x430   : > { %2360 = vmatmul.mubr.msk.f32.vlgmr.msra.gmra.mrb[6].mxu1 %vm966_vm3, %v659_v38 }
 0x431   : > { %2369 = vmatprep.mubr.msk.f32.mxu1 %vm2836_vm1, %v2837_v37 }
 0x4f7   : > { %v1039_v43 = vpop.f32.mrb[0].mxu1 }
 0x4f8   : > { %v1277_v44 = vadd.f32 %v1275_v42, %v1039_v43  ;;  %v2346_v45 = vpop.f32.mrb[1].mxu1 }
 0x4fa   : > { %v1281_v46 = vsel %vm966_vm3, %v1277_v44, -inf }
 0x4fb   : > { %1282 = vmax.xlane.f32.xlu0 %v1281_v46  ;;  %v1115_v47 = vpop.f32.mrb[2].mxu1 }
 0x4fc   : > { %v1278_v48 = vadd.f32 %v1275_v42, %v1115_v47  ;;  %v2351_v49 = vpop.f32.mrb[3].mxu1 }
 0x4fe   : > { %v1284_v50 = vsel %vm966_vm3, %v1278_v48, -inf }
 0x4ff   : > { %1285 = vmax.xlane.f32.xlu1 %v1284_v50  ;;  %v1191_v51 = vpop.f32.mrb[4].mxu1 }
 0x500   : > { %v1279_v52 = vadd.f32 %v1275_v42, %v1191_v51  ;;  %v2356_v53 = vpop.f32.mrb[5].mxu1 }
 0x502   : > { %v1287_v55 = vsel %vm966_vm3, %v1279_v52, -inf }
 0x503   : > { %961 = vmax.xlane.f32.xlu1 %v960_v54  ;;  %1288 = vmax.xlane.f32.xlu0 %v1287_v55  ;;  %v1267_v57 = vpop.f32.mrb[6].mxu1 }
 0x504   : > { %v1280_v61 = vadd.f32 %v1275_v42, %v1267_v57  ;;  %v2361_v62 = vpop.f32.mrb[7].mxu1 }
 0x506   : > { %v1290_v63 = vsel %vm966_vm3, %v1280_v61, -inf }
 0x507   : > { %1291 = vmax.xlane.f32.xlu0 %v1290_v63 }
 0x514   : > { %810 = vrot.lane.b32.xlu1 %v3176_v58, %s2845_s19 }
 0x518   : > { %812 = vrot.lane.b32.xlu1 %v3180_v59, %s2845_s19 }
 0x51d   : > { %808 = vrot.lane.b32.xlu0 %v3169_v56, %s2845_s19 }
 0x588   : > { %v1283_v1 = vpop.xlane.xlu0 %1282 }
 0x589   : > { %v1293_v2 = vsub.f32 %v1277_v44, %v1283_v1 }
 0x58b   : > { %v1297_v3 = vmul.f32 1.442695, %v1293_v2 }
 0x58c   : > { %v1286_v4 = vpop.xlane.xlu1 %1285 }
 0x58d   : > { %2598 = vpow2.f32 %v1297_v3  ;;  %v1294_v6 = vsub.f32 %v1278_v48, %v1286_v4 }
 0x58f   : > { %v1299_v10 = vmul.f32 1.442695, %v1294_v6 }
 0x590   : > { %v1289_v11 = vpop.xlane.xlu0 %1288  ;;  %v962_v27 = vpop.xlane.xlu1 %961 }
 0x591   : > { %2600 = vpow2.f32 %v1299_v10  ;;  %v1295_v12 = vsub.f32 %v1279_v52, %v1289_v11  ;;  %vm963_vm6 = vcmp.gt.f32.partialorder %v962_v27, 0.0 }
 0x592   : > { %v2257_v1 = vsel %vm963_vm6, 1.0, %v2837_v37 }
 0x593   : > { %v1301_v13 = vmul.f32 1.442695, %v1295_v12 }
 0x594   : > { %v1292_v16 = vpop.xlane.xlu0 %1291  ;;  %v811_v30 = vpop.permute.xlu1 %810 }
 0x595   : > { %2602 = vpow2.f32 %v1301_v13  ;;  %v1296_v58 = vsub.f32 %v1280_v61, %v1292_v16 }
 0x597   : > { %v3270_v17 = vpop.eup %2598  ;;  %v1303_v59 = vmul.f32 1.442695, %v1296_v58 }
 0x598   : > { %v1305_v56 = vsel %vm966_vm3, %v3270_v17, 0.0  ;;  %v809_v26 = vpop.permute.xlu0 %808  ;;  %v813_v32 = vpop.permute.xlu1 %812 }
 0x599   : > { %2604 = vpow2.f32 %v1303_v59  ;;  %1306 = vadd.xlane.f32.xlu0 %v1305_v56  ;;  %v820_v36 = vcombine.low %v809_v26, %v813_v32  ;;  %v821_v38 = vcombine.high %v809_v26, %v813_v32 }
 0x59b   : > { %v3274_v18 = vpop.eup %2600  ;;  %v828_v44 = vrot.slane %v820_v36, %v3193_v9  ;;  %v835_v45 = vrot.slane %v821_v38, %v3193_v9 }
 0x59c   : > { %v1308_v19 = vsel %vm966_vm3, %v3274_v18, 0.0 }
 0x59d   : > { %1309 = vadd.xlane.f32.xlu0 %v1308_v19 }
 0x59f   : > { %v3278_v21 = vpop.eup %2602 }
 0x5a0   : > { %v1311_v22 = vsel %vm966_vm3, %v3278_v21, 0.0 }
 0x5a1   : > { %1312 = vadd.xlane.f32.xlu0 %v1311_v22  ;;  %v1336_v22 = vrot.slane %v2257_v1, %v3141_v14 }
 0x5a3   : > { %v3282_v23 = vpop.eup %2604 }
 0x5a4   : > { %v1314_v25 = vsel %vm966_vm3, %v3282_v23, 0.0 }
 0x5a5   : > { %1315 = vadd.xlane.f32.xlu0 %v1314_v25 }
 0x5bb   : > { %814 = vrot.lane.b32.xlu0 %v3184_v60, %s2845_s19 }
 0x626   : > { %v1307_v28 = vpop.xlane.xlu0 %1306 }
 0x627   : > { %2606 = vrcp.f32 %v1307_v28 }
 0x62a   : > { %v1310_v29 = vpop.xlane.xlu0 %1309 }
 0x62b   : > { %2608 = vrcp.f32 %v1310_v29 }
 0x62e   : > { %v1313_v31 = vpop.xlane.xlu0 %1312 }
 0x62f   : > { %2610 = vrcp.f32 %v1313_v31 }
 0x631   : > { %v2607_v34 = vpop.eup %2606 }
 0x632   : > { %v1316_v33 = vpop.xlane.xlu0 %1315  ;;  %v1321_v60 = vmul.f32 %v2607_v34, %v1307_v28 }
 0x633   : > { %2612 = vrcp.f32 %v1316_v33 }
 0x634   : > { %v1325_v52 = vsub.f32 2.0, %v1321_v60 }
 0x635   : > { %v2609_v35 = vpop.eup %2608 }
 0x636   : > { %v815_v39 = vpop.permute.xlu0 %814  ;;  %v1322_v42 = vmul.f32 %v2609_v35, %v1310_v29  ;;  %v1329_v11 = vmul.f32 %v2607_v34, %v1325_v52 }
 0x637   : > { %v836_v40 = vcombine.low %v811_v30, %v815_v39  ;;  %v837_v41 = vcombine.high %v811_v30, %v815_v39 }
 0x638   : > { %v1326_v53 = vsub.f32 2.0, %v1322_v42  ;;  %v1337_v29 = vmul.f32 %v1336_v22, %v1329_v11  ;;  %v375_v11 = vld [vmem:[#allocation8 + $0x18] sm:$0xff] }
 0x639   : > { %v2611_v43 = vpop.eup %2610  ;;  %v844_v46 = vrot.slane %v836_v40, %v3193_v9  ;;  %v851_v47 = vrot.slane %v837_v41, %v3193_v9 }
 0x63a   : > { %v1323_v54 = vmul.f32 %v2611_v43, %v1313_v31  ;;  %v1330_v12 = vmul.f32 %v2609_v35, %v1326_v53  ;;  %v1341_v14 = vmul.f32 %v3270_v17, %v1337_v29 }
 0x63b   : > { %v852_v48 = vcombine.low %v828_v44, %v844_v46  ;;  %v853_v49 = vcombine.high %v828_v44, %v844_v46  ;;  %v868_v50 = vcombine.low %v835_v45, %v851_v47  ;;  %v869_v51 = vcombine.high %v835_v45, %v851_v47 }
 0x63c   : > { %v1327_v13 = vsub.f32 2.0, %v1323_v54  ;;  %v1338_v30 = vmul.f32 %v1336_v22, %v1330_v12 }
 0x63d   : > { %v2613_v55 = vpop.eup %2612  ;;  %v860_v57 = vrot.slane %v852_v48, %v3204_v20  ;;  %v867_v61 = vrot.slane %v853_v49, %v3204_v20  ;;  %v876_v62 = vrot.slane %v868_v50, %v3204_v20  ;;  %v883_v63 = vrot.slane %v869_v51, %v3204_v20 }
 0x63e   : > { %v1324_v2 = vmul.f32 %v2613_v55, %v1316_v33  ;;  %v1331_v31 = vmul.f32 %v2611_v43, %v1327_v13  ;;  %v1342_v40 = vmul.f32 %v3274_v18, %v1338_v30  ;;  %v3326_v18 = vld [vmem:[#allocation8] sm:$0xff] }
 0x63f   : > { %v888_v3 = vcombine.low %v860_v57, %v867_v61  ;;  %v2255_v4 = vcombine.high %v860_v57, %v867_v61  ;;  %v904_v6 = vcombine.low %v876_v62, %v883_v63  ;;  %v2256_v10 = vcombine.high %v876_v62, %v883_v63 }
 0x640   : > { %v1328_v16 = vsub.f32 2.0, %v1324_v2  ;;  %v1339_v41 = vmul.f32 %v1336_v22, %v1331_v31 }
 0x641   : > { %v895_v58 = vrot.slane %v888_v3, %v3193_v9  ;;  %v903_v59 = vrot.slane %v2255_v4, %v3193_v9  ;;  %v911_v56 = vrot.slane %v904_v6, %v3193_v9  ;;  %v919_v19 = vrot.slane %v2256_v10, %v3193_v9  ;;  %v374_v10 = vld [vmem:[#allocation8 + $0x10] sm:$0xff] }
 0x642   : > { %v1332_v32 = vmul.f32 %v2613_v55, %v1328_v16  ;;  %v1343_v44 = vmul.f32 %v3278_v21, %v1339_v41  ;;  %v3328_v21 = vld [vmem:[#allocation8 + $0x8] sm:$0xff] }
 0x643   : > { %v920_v25 = vcombine.low %v895_v58, %v903_v59  ;;  %v936_v26 = vcombine.low %v911_v56, %v919_v19  ;;  %v921_v27 = vcombine.high %v895_v58, %v903_v59  ;;  %v937_v28 = vcombine.high %v911_v56, %v919_v19 }
 0x644   : > { %v1340_v60 = vmul.f32 %v1336_v22, %v1332_v32  ;;  %v2439_v59 = vpack.c.bf16 %v375_v11, %v374_v10 }
 0x645   : > { %v928_v33 = vrot.slane %v920_v25, %v3204_v20  ;;  %v944_v34 = vrot.slane %v936_v26, %v3204_v20  ;;  %v935_v35 = vrot.slane %v921_v27, %v3204_v20  ;;  %v951_v36 = vrot.slane %v937_v28, %v3204_v20 }
 0x646   : > { %v1344_v17 = vmul.f32 %v3282_v23, %v1340_v60  ;;  %v2436_v23 = vpack.c.bf16 %v3328_v21, %v3326_v18 }
 0x647   : > { %v952_v38 = vcombine.low %v928_v33, %v944_v34  ;;  %v953_v39 = vcombine.high %v928_v33, %v944_v34  ;;  %v954_v42 = vcombine.low %v935_v35, %v951_v36  ;;  %v955_v43 = vcombine.high %v935_v35, %v951_v36 }
 0x649   : > { %2363 = vmatpush3.msra.mxu0 %v952_v38  ;;  %2368 = vmatpush3.msra.mxu1 %v953_v39 }
 0x64a   : > { %2365 = vmatmul.mubr.msk.f32.vlgmr.msra.gmra.mrb[2].mxu0 %vm966_vm3, %v1341_v14  ;;  %2370 = vmatmul.mubr.msk.f32.vlgmr.msra.gmra.mrb[8].mxu1 %vm966_vm3, %v1342_v40 }
 0x64b   : > { %2372 = vmatprep.subr.mxu0 %v2837_v37  ;;  %2377 = vmatprep.subr.mxu1 %v2837_v37 }
 0x64c   : > { %2373 = vmatpush3.msra.mxu0 %v954_v42  ;;  %2378 = vmatpush3.msra.mxu1 %v955_v43 }
 0x64d   : > { %2374 = vmatprep.mubr.msk.f32.mxu0 %vm2836_vm1, %v2837_v37  ;;  %2379 = vmatprep.mubr.msk.f32.mxu1 %vm2836_vm1, %v2837_v37 }
 0x64e   : > { %2375 = vmatmul.mubr.msk.f32.vlgmr.msra.gmra.mrb[4].mxu0 %vm966_vm3, %v1343_v44  ;;  %2380 = vmatmul.mubr.msk.f32.vlgmr.msra.gmra.mrb[10].mxu1 %vm966_vm3, %v1344_v17 }
 0x64f   : > { %2435 = vmatprep.subr.bf16.mxu1 %v2835_v24  ;;  %2390 = vmatprep.mubr.msk.f32.mxu1 %vm2836_vm1, %v2837_v37 }
 0x650   : > { %2447 = vmatprep.subr.bf16.mxu0 %v2835_v24  ;;  %2420 = vmatprep.mubr.msk.f32.mxu0 %vm2836_vm1, %v2837_v37 }
 0x651   : > { %2437 = vmatpush3.bf16.msra.mxu1 %v2436_v23 }
 0x652   : > { %2438 = vmatprep.subr.bf16.mxu1 %v2835_v24 }
 0x655   : > { %2440 = vmatpush3.bf16.msra.mxu1 %v2439_v59 }
 0x656   : > { %2441 = vmatprep.subr.bf16.mxu1 %v2835_v24 }
 0x71d   : > { %v1414_v45 = vpop.f32.mrb[2].mxu0  ;;  %v1487_v46 = vpop.f32.mrb[8].mxu1 }
 0x71e   : > { %v2366_v47 = vpop.f32.mrb[3].mxu0  ;;  %v2371_v48 = vpop.f32.mrb[9].mxu1 }
 0x721   : > { %v1560_v49 = vpop.f32.mrb[4].mxu0  ;;  %v1633_v50 = vpop.f32.mrb[10].mxu1 }
 0x722   : > { %v1637_v51 = vcombine.low %v1414_v45, %v1560_v49  ;;  %v1638_v52 = vcombine.high %v1414_v45, %v1560_v49  ;;  %v1653_v53 = vcombine.low %v1487_v46, %v1633_v50  ;;  %v1654_v54 = vcombine.high %v1487_v46, %v1633_v50  ;;  %v2376_v55 = vpop.f32.mrb[5].mxu0  ;;  %v2381_v57 = vpop.f32.mrb[11].mxu1 }
 0x723   : > { %v2569_v49 = vpack.i.bf16 %v375_v11, %v374_v10  ;;  %v377_v55 = vld [vmem:[#allocation8 + $0x28] sm:$0xff]  ;;  %v378_v57 = vld [vmem:[#allocation8 + $0x30] sm:$0xff] }
 0x724   : > { %v1645_v61 = vrot.slane %v1637_v51, %v3193_v9  ;;  %v1652_v62 = vrot.slane %v1638_v52, %v3193_v9  ;;  %v1661_v63 = vrot.slane %v1653_v53, %v3193_v9  ;;  %v1668_v1 = vrot.slane %v1654_v54, %v3193_v9  ;;  %v376_v54 = vld [vmem:[#allocation8 + $0x20] sm:$0xff] }
 0x726   : > { %v1669_v2 = vcombine.low %v1645_v61, %v1661_v63  ;;  %v1670_v3 = vcombine.high %v1645_v61, %v1661_v63  ;;  %v1685_v4 = vcombine.low %v1652_v62, %v1668_v1  ;;  %v1686_v6 = vcombine.high %v1652_v62, %v1668_v1 }
 0x727   : > { %v2584_v61 = vpack.i.bf16 %v377_v55, %v376_v54 }
 0x728   : > { %v1677_v12 = vrot.slane %v1669_v2, %v3204_v20  ;;  %v1684_v13 = vrot.slane %v1670_v3, %v3204_v20  ;;  %v1693_v16 = vrot.slane %v1685_v4, %v3204_v20  ;;  %v1700_v58 = vrot.slane %v1686_v6, %v3204_v20 }
 0x72a   : > { %v1705_v56 = vcombine.low %v1677_v12, %v1684_v13  ;;  %v2270_v19 = vcombine.high %v1677_v12, %v1684_v13  ;;  %v1721_v22 = vcombine.low %v1693_v16, %v1700_v58  ;;  %v2271_v25 = vcombine.high %v1693_v16, %v1700_v58 }
 0x72c   : > { %v1712_v26 = vrot.slane %v1705_v56, %v3193_v9  ;;  %v1720_v27 = vrot.slane %v2270_v19, %v3193_v9  ;;  %v1728_v28 = vrot.slane %v1721_v22, %v3193_v9  ;;  %v1736_v29 = vrot.slane %v2271_v25, %v3193_v9 }
 0x72e   : > { %v1738_v30 = vcombine.high %v1712_v26, %v1720_v27  ;;  %v1754_v31 = vcombine.high %v1728_v28, %v1736_v29  ;;  %v1737_v32 = vcombine.low %v1712_v26, %v1720_v27  ;;  %v1753_v33 = vcombine.low %v1728_v28, %v1736_v29 }
 0x730   : > { %v1752_v34 = vrot.slane %v1738_v30, %v3204_v20  ;;  %v1768_v35 = vrot.slane %v1754_v31, %v3204_v20  ;;  %v1745_v36 = vrot.slane %v1737_v32, %v3204_v20  ;;  %v1761_v38 = vrot.slane %v1753_v33, %v3204_v20 }
 0x732   : > { %v1771_v39 = vcombine.low %v1752_v34, %v1768_v35  ;;  %v1770_v14 = vcombine.high %v1745_v36, %v1761_v38  ;;  %v1772_v40 = vcombine.high %v1752_v34, %v1768_v35  ;;  %v1769_v41 = vcombine.low %v1745_v36, %v1761_v38 }
 0x734   : > { %1778 = vrot.lane.b32.xlu0 %v1771_v39, %s2846_s16  ;;  %1774 = vrot.lane.b32.xlu1 %v1770_v14, %s2847_s9  ;;  %v1890_v14 = vsub.s32 3, %v3125_v5 }
 0x738   : > { %1782 = vrot.lane.b32.xlu1 %v1772_v40, %s2848_s7  ;;  %1790 = vrot.lane.b32.xlu0 %v3145_v15, %s2838_s15  ;;  %v1891_v40 = vrot.slane %v3131_v7, %v1890_v14 }
 0x7a6   : > { %v1775_v9 = vpop.permute.xlu1 %1774  ;;  %v1779_v60 = vpop.permute.xlu0 %1778 }
 0x7a7   : > { %v1785_v42 = vsel %vm966_vm3, %v1769_v41, %v1775_v9 }
 0x7a8   : > { %v1787_v43 = vsel %vm1786_vm7, %v1785_v42, %v1779_v60 }
 0x7aa   : > { %v1783_v20 = vpop.permute.xlu1 %1782  ;;  %v1791_v17 = vpop.permute.xlu0 %1790 }
 0x7ab   : > { %v1789_v44 = vsel %vm1788_vm8, %v1787_v43, %v1783_v20 }
 0x7ac   : > { %2391 = vmatmul.mubr.msk.f32.vlgmr.msra.gmra.mrb[12].mxu1 %vm383_vm0, %v1789_v44 }
 0x7ad   : > { %2401 = vmatprep.mubr.msk.f32.mxu1 %vm2836_vm1, %v2837_v37 }
 0x87f   : > { %v1862_v23 = vpop.f32.mrb[12].mxu1 }
 0x880   : > { %v1863_v45 = vadd.f32 %v1862_v23, %v1791_v17  ;;  %v2392_v46 = vpop.f32.mrb[13].mxu1 }
 0x882   : > { %v3357_v47 = vadd.f32 %v1863_v45, %v3120_v0  ;;  %v2564_v0 = vpack.i.bf16 %v3328_v21, %v3326_v18 }
 0x884   : > { %v1867_v48 = vsel %vm383_vm0, %v3357_v47, 0.0 }
 0x885   : > { %1868 = vadd.xlane.f32.xlu1 %v1867_v48 }
 0x896   : > { %2570 = vrot.lane.b32.xlu1 %v2569_v49, %s2834_s27 }
 0x89a   : > { %1880 = vrot.lane.b32.xlu1 %v3145_v15, %s2845_s19  ;;  %v379_v15 = vld [vmem:[#allocation8 + $0x38] sm:$0xff] }
 0x89b   : > { %v2589_v62 = vpack.i.bf16 %v379_v15, %v378_v57 }
 0x89e   : > { %2575 = vrot.lane.b32.xlu1 %v2564_v0, %s2838_s15 }
 0x8a2   : > { %2585 = vrot.lane.b32.xlu1 %v2584_v61, %s2838_s15 }
 0x8a6   : > { %2010 = vrot.lane.b32.xlu1 %v3134_v8, %s2838_s15 }
 0x912   : > { %v1869_v50 = vpop.xlane.xlu1 %1868 }
 0x913   : > { %v1870_v51 = vmul.f32 0.03125, %v1869_v50 }
 0x915   : > { %v1871_v37 = vsub.f32 %v3357_v47, %v1870_v51 }
 0x916   : > { %v2571_v21 = vpop.permute.xlu1 %2570 }
 0x917   : > { %v1872_v52 = vmul.f32 %v1871_v37, %v1871_v37  ;;  %v2573_v3 = vunpack.i.h.bf16 %v2571_v21  ;;  %v2572_v10 = vunpack.i.l.bf16 %v2571_v21 }
 0x919   : > { %v1873_v53 = vsel %vm383_vm0, %v1872_v52, 0.0  ;;  %v2445_v16 = vpack.c.bf16 %v2573_v3, %v2572_v10 }
 0x91a   : > { %1874 = vadd.xlane.f32.xlu0 %v1873_v53  ;;  %v1881_v11 = vpop.permute.xlu1 %1880 }
 0x91e   : > { %v2576_v58 = vpop.permute.xlu1 %2575 }
 0x91f   : > { %v2578_v59 = vunpack.i.h.bf16 %v2576_v58 }
 0x922   : > { %v2586_v26 = vpop.permute.xlu1 %2585 }
 0x923   : > { %v2588_v29 = vunpack.i.h.bf16 %v2586_v26  ;;  %v2587_v30 = vunpack.i.l.bf16 %v2586_v26 }
 0x925   : > { %v2454_v34 = vpack.c.bf16 %v2588_v29, %v2587_v30 }
 0x926   : > { %v2011_v20 = vpop.permute.xlu1 %2010 }
 0x930   : > { %2565 = vrot.lane.b32.xlu0 %v2564_v0, %s2834_s27 }
 0x934   : > { %1884 = vrot.lane.b32.xlu0 %v3134_v8, %s2845_s19  ;;  %v2577_v8 = vunpack.i.l.bf16 %v2576_v58 }
 0x936   : > { %v2448_v19 = vpack.c.bf16 %v2578_v59, %v2577_v8 }
 0x938   : > { %2580 = vrot.lane.b32.xlu0 %v2569_v49, %s2838_s15  ;;  %2449 = vmatpush3.bf16.msra.mxu0 %v2448_v19 }
 0x939   : > { %2450 = vmatprep.subr.bf16.mxu0 %v2835_v24 }
 0x93c   : > { %2590 = vrot.lane.b32.xlu0 %v2589_v62, %s2838_s15  ;;  %s3391_s15 = scalar_lea.hbm %s3447_s6, %s2276_s13 }
 0x9a7   : > { %v1875_v18 = vpop.xlane.xlu0 %1874 }
 0x9a8   : > { %v1876_v63 = vmul.f32 0.03125, %v1875_v18 }
 0x9aa   : > { %v1877_v1 = vadd.f32 1e-12, %v1876_v63 }
 0x9ab   : > { %v2566_v2 = vpop.permute.xlu0 %2565 }
 0x9ac   : > { %2614 = vrsqrt.f32 %v1877_v1  ;;  %v2568_v4 = vunpack.i.h.bf16 %v2566_v2  ;;  %v2567_v6 = vunpack.i.l.bf16 %v2566_v2 }
 0x9ae   : > { %v2442_v12 = vpack.c.bf16 %v2568_v4, %v2567_v6 }
 0x9af   : > { %v1885_v13 = vpop.permute.xlu0 %1884 }
 0x9b0   : > { %2443 = vmatpush3.bf16.msra.mxu1 %v2442_v12 }
 0x9b1   : > { %2444 = vmatprep.subr.bf16.mxu1 %v2835_v24 }
 0x9b3   : > { %v2581_v56 = vpop.permute.xlu0 %2580 }
 0x9b4   : > { %2446 = vmatpush3.bf16.msra.mxu1 %v2445_v16  ;;  %v2583_v22 = vunpack.i.h.bf16 %v2581_v56  ;;  %v2582_v25 = vunpack.i.l.bf16 %v2581_v56 }
 0x9b6   : > { %v2615_v27 = vpop.eup %2614  ;;  %v2451_v28 = vpack.c.bf16 %v2583_v22, %v2582_v25 }
 0x9b7   : > { %v1879_v31 = vmul.f32 %v2615_v27, %v1871_v37  ;;  %v2591_v32 = vpop.permute.xlu0 %2590 }
 0x9b8   : > { %2452 = vmatpush3.bf16.msra.mxu0 %v2451_v28  ;;  %v2593_v35 = vunpack.i.h.bf16 %v2591_v32  ;;  %v2592_v36 = vunpack.i.l.bf16 %v2591_v32 }
 0x9b9   : > { %v1883_v33 = vmul.f32 %v1881_v11, %v1879_v31  ;;  %2453 = vmatprep.subr.bf16.mxu0 %v2835_v24 }
 0x9ba   : > { %v2457_v39 = vpack.c.bf16 %v2593_v35, %v2592_v36 }
 0x9bb   : > { %v1887_v38 = vadd.f32 %v1885_v13, %v1883_v33 }
 0x9bc   : > { %2455 = vmatpush3.bf16.msra.mxu0 %v2454_v34 }
 0x9bd   : > { %2402 = vmatmul.mubr.msk.f32.vlgmr.msra.gmra.mrb[14].mxu1 %vm383_vm0, %v1887_v38  ;;  %2456 = vmatprep.subr.bf16.mxu0 %v2835_v24 }
 0x9c0   : > { %2458 = vmatpush3.bf16.msra.mxu0 %v2457_v39 }
 0xa90   : > { %v1977_v41 = vpop.f32.mrb[14].mxu1 }
 0xa91   : > { %v1978_v9 = vadd.f32 %v1977_v41, %v1891_v40  ;;  %v2403_v60 = vpop.f32.mrb[15].mxu1 }
 0xa93   : > { %v1981_v42 = vmax.f32 %v1978_v9, 0.0 }
 0xa95   : > { %2421 = vmatmul.mubr.msk.f32.vlgmr.msra.gmra.mrb[6].mxu0 %vm440_vm2, %v1981_v42 }
 0xb68   : > { %v2082_v43 = vpop.f32.mrb[6].mxu0 }
 0xb69   : > { %v2083_v44 = vadd.f32 %v2082_v43, %v2011_v20  ;;  %v2422_v24 = vpop.f32.mrb[7].mxu0 }
 0xb6b   : > { %v2086_v17 = vadd.f32 %v2083_v44, %v3357_v47 }
 0xb6d   : > { %2087 = vst.msk [vmem:[%s360_s18] sm:$0xff] %vm383_vm0, %v2086_v17 }
 0xb6e   : > { %2745 = shalt.err (!%p2742_p13)
}
 0xb6f   : > { %s2746_s3 = scalar_lea.hbm %s3391_s15, 128  ;;  %s2750_s20 = scalar_lea.hbm %s3447_s6, 256 }
 0xb70   : > { %p2747_p8 = scmp.ne.s32.totalorder %s3391_s15, %s2746_s3  ;;  %p2751_p12 = scmp.lt.u32.totalorder %s3391_s15, %s3447_s6 }
 0xb71   : > { %p2752_p0 = scmp.lt.u32.totalorder %s2750_s20, %s2746_s3  ;;  %p2754_p6 = scmp.lt.u32.totalorder %s2746_s3, %s3391_s15 }
 0xb72   : > { %p2748_p11 = pnand %p2747_p8, %p3474_p10 }
 0xb73   : > { %p2753_p1 = por %p2752_p0, %p2751_p12 }
 0xb74   : > { %p2749_p2 = pneg %p2748_p11 }
 0xb75   : > { %p2755_p3 = por %p2754_p6, %p2753_p1 }
 0xb77   : > { %p2756_p4 = pnand %p2755_p3, %p2749_p2 }
 0xb79   : > { %2759 = shalt.err (!%p2756_p4)
}
 0xb7a   : > { %2471 = dma.vmem_to_hbm [thread:$0]  (%p3474_p10), %s3393_s29, 128, %s3391_s15, %s2089_s17  }
 0xb7b PF: > { %s2115_s16 = sand.u32 1, %s2806_s21   ;;  %p3475_p9 = scmp.ne.s32.totalorder %s3458_s30, 0 }
 0xb7c   : > { %p3476_p5 = scmp.ge.s32.totalorder %s2826_s26, 2  ;;  %s2116_s9 = scalar_lea.sflag [#allocation4], %s2115_s16 }
 0xb7e   : > { %p2488_p7 = pnand %p3476_p5, %p3475_p9 }
 0xb80   : > { %2801 = dma.done.wait (!%p2488_p7), %s2116_s9, 128  }
 0xb81   : > { %2803 = vsyncadd (!%p2488_p7), %s2116_s9, 4294967168  ;;  %s26_s26 = sadd.s32 1, %s2826_s26   ;;  %s3477_s10 = sld [smem:[#allocation18_spill]] }
 0xb82   : > { %p23_p13 = scmp.ge.s32.totalorder %s26_s26, 4   ;;  %s3478_s24 = sld [smem:[#allocation16_spill]] }
 0xb83   : > { %s3479_s25 = sld [smem:[#allocation17_spill]]  ;;  %s3480_s21 = smov %s2810_s22 }
 0xb84   : > { %s3481_s22 = smov %s2814_s23  ;;  %25 = sbr.rel (!%p23_p13) target bundleno = 12 (0xc), region = 113 }
 0xb87   : > { %s3482_s23 = smov %s3477_s10 }
 0xb8b   :  { %2121 = vsyncpa [#allocation3], 1 }
 0xb8c   :  { %2123 = vsyncpa [#allocation3 + $0x1], 1 }
 0xb8d   :  { %2124 = vsyncpa [#allocation6], 1 }
 0xb8e   :  { %2126 = vsyncpa [#allocation6 + $0x1], 1 }
 0xb8f   :  { %2127 = vsyncpa [#allocation9], 1 }
 0xb90   :  { %2128 = vsyncpa [#allocation4], 1 }
 0xb91   :  { %2130 = vsyncpa [#allocation4 + $0x1], 1 }

</bundles_post_ra>
